<compile_context>
chip_gen: v7x
topology: tpu7x:2x2x1
jax: 0.10.0
libtpu: 0.0.40
codegen_flags: <defaults>
</compile_context>

<pallas_src>
import math
from functools import partial

import jax
import jax.numpy as jnp
from jax.experimental import pallas as pl
from jax.experimental.pallas import tpu as pltpu


# ---------------------------------------------------------------------------
# In-kernel helpers
# ---------------------------------------------------------------------------
def _layer_norm(x, gamma, beta, eps=1e-5):
    mu = jnp.mean(x, axis=-1, keepdims=True)
    var = jnp.mean((x - mu) ** 2, axis=-1, keepdims=True)
    return (x - mu) * jax.lax.rsqrt(var + eps) * gamma + beta


def _gelu_exact(x):
    # PyTorch nn.GELU() default (erf based)
    return 0.5 * x * (1.0 + jax.lax.erf(x * (1.0 / math.sqrt(2.0))))


# ---------------------------------------------------------------------------
# Fused kernel: one (batch-tile, layer) pair per grid step.
# ---------------------------------------------------------------------------
def fused_transformer_kernel(
    x_ref, mrow_ref,
    wq_ref, wk_ref, wv_ref, wo_ref,
    g1_ref, be1_ref, w1_ref, b1_ref, w2_ref, b2_ref, g2_ref, be2_ref,
    wp_ref, bp_ref,
    out_ref,
    xs_ref,                     # VMEM residual carry, persists across the layer axis
    *, num_heads,
):
    l = pl.program_id(1)
    n_layers = pl.num_programs(1)
    Bt, S, D = x_ref.shape
    N = Bt * S
    H = num_heads
    dk = D // H
    scale = 1.0 / math.sqrt(dk)

    # ---- residual carry init (first layer step of this batch tile) ----
    @pl.when(l == 0)
    def _():
        xs_ref[...] = x_ref[...].reshape(N, D).astype(jnp.float32)

    x = xs_ref[...]                                   # (N, D) f32

    # Key-side additive attention bias from the 1-D mask (no (S,S) pair mask).
    mrow = mrow_ref[...].astype(jnp.float32)          # (Bt, 1, S)
    bias_k = jnp.where(mrow == 0.0, -1e9, 0.0)        # (Bt, 1, S)
    bias_k = jnp.tile(bias_k, (H, 1, 1))              # (H*Bt, 1, S), head-major fold

    # ----- input sublayer: x + MHA(LayerNorm(x)) -----
    h = _layer_norm(x, g1_ref[0], be1_ref[0]).astype(jnp.bfloat16)    # (N, D)
    q = jnp.dot(h, wq_ref[0], preferred_element_type=jnp.float32)     # (N, D)
    k = jnp.dot(h, wk_ref[0], preferred_element_type=jnp.float32)
    v = jnp.dot(h, wv_ref[0], preferred_element_type=jnp.float32)

    def split_heads(t):          # (N, D) -> (H*Bt, S, dk), head-major fold
        return jnp.transpose(t.reshape(N, H, dk), (1, 0, 2)).reshape(H * Bt, S, dk)

    qh = split_heads(q).astype(jnp.bfloat16)
    kh = split_heads(k).astype(jnp.bfloat16)
    vh = split_heads(v).astype(jnp.bfloat16)

    s = jnp.einsum("bqd,bkd->bqk", qh, kh,
                   preferred_element_type=jnp.float32)                # (H*Bt, S, S)
    s = s * scale + bias_k                          # bias broadcasts over q rows
    m = jnp.max(s, axis=-1, keepdims=True)
    e = jnp.exp(s - m)                              # masked keys -> exactly 0 (underflow)
    p = e * pl.reciprocal(jnp.sum(e, axis=-1, keepdims=True), approx=True)
    ctx = jnp.einsum("bqk,bkd->bqd", p.astype(jnp.bfloat16), vh,
                     preferred_element_type=jnp.float32)              # (H*Bt, S, dk)
    ctx = jnp.transpose(ctx.reshape(H, N, dk), (1, 0, 2)).reshape(N, D)
    attn = jnp.dot(ctx.astype(jnp.bfloat16), wo_ref[0],
                   preferred_element_type=jnp.float32)
    x = x + attn

    # ----- output sublayer: x + FFN(LayerNorm(x)) -----
    h2 = _layer_norm(x, g2_ref[0], be2_ref[0]).astype(jnp.bfloat16)
    f = jnp.dot(h2, w1_ref[0], preferred_element_type=jnp.float32) + b1_ref[0]
    f = _gelu_exact(f)
    f = jnp.dot(f.astype(jnp.bfloat16), w2_ref[0],
                preferred_element_type=jnp.float32) + b2_ref[0]
    x = x + f

    xs_ref[...] = x

    # ----- final projection of the LAST time step (last layer step only) -----
    @pl.when(l == n_layers - 1)
    def _():
        x3 = x.reshape(Bt, S, D)
        x_in = x_ref[...].astype(jnp.float32)                     # (Bt, S, D)
        m_last = mrow[:, 0, S - 1:S]                              # (Bt, 1)
        # Reference semantics: a position with mask==0 keeps its raw input
        # (attention/FFN contributions zeroed), so select per batch element.
        x_last = jnp.where(m_last > 0.0, x3[:, S - 1, :], x_in[:, S - 1, :])
        y = jnp.dot(x_last.astype(jnp.bfloat16), wp_ref[...],
                    preferred_element_type=jnp.float32) + bp_ref[...]
        out_ref[...] = y.astype(out_ref.dtype)                    # (Bt, Hpad) lane-dense


# ---------------------------------------------------------------------------
# One-time parameter packing: bf16 matmul weights + lane-padded projection.
# (Done once, NOT per forward call.)
# ---------------------------------------------------------------------------
def prepare_params(params, lane=128):
    wq, wk, wv, wo, g1, be1, w1, b1, w2, b2, g2, be2, wp, bp = params
    bf = lambda w: w.astype(jnp.bfloat16)
    D, H = wp.shape
    Hpad = -(-H // lane) * lane
    wp_pad = jnp.zeros((D, Hpad), jnp.float32).at[:, :H].set(wp).astype(jnp.bfloat16)
    bp_pad = jnp.zeros((1, Hpad), jnp.float32).at[:, :H].set(bp)
    packed = (bf(wq), bf(wk), bf(wv), bf(wo), g1, be1,
              bf(w1), b1, bf(w2), b2, g2, be2, wp_pad, bp_pad)
    return packed, H


# ---------------------------------------------------------------------------
# Wrapper: single pallas_call for the whole forward pass.
# ---------------------------------------------------------------------------
def transformer_forward(x, mask, packed_params, num_heads, out_dim, *, batch_tile=None):
    (wq, wk, wv, wo, g1, be1, w1, b1, w2, b2, g2, be2, wp_pad, bp_pad) = packed_params
    B, S, D = x.shape
    L = wq.shape[0]
    Hpad = wp_pad.shape[-1]
    assert D % num_heads == 0

    if mask is None:
        mask = jnp.ones((B, S), jnp.float32)
    mrow = mask.astype(jnp.float32).reshape(B, 1, S)

    # Batch tile: pick Bt*S >= 128/256 for real workloads; demo uses the whole
    # (tiny) batch.  Bt must divide B (and be a multiple of 8 if Bt < B).
    Bt = batch_tile or B
    assert B % Bt == 0
    nb = B // Bt

    def w_spec(arr):       # per-layer streamed weight block (index follows `l`)
        shape = arr.shape
        return pl.BlockSpec((1,) + shape[1:],
                            lambda b, l, n=len(shape): (l,) + (0,) * (n - 1))

    def const_spec(arr):   # fetched once, stays VMEM-resident (tiny: wp/bp only)
        return pl.BlockSpec(arr.shape, lambda b, l, n=arr.ndim: (0,) * n)

    in_specs = [
        pl.BlockSpec((Bt, S, D), lambda b, l: (b, 0, 0)),   # x (constant in l -> no re-DMA)
        pl.BlockSpec((Bt, 1, S), lambda b, l: (b, 0, 0)),   # 1-D mask, row view only
        w_spec(wq), w_spec(wk), w_spec(wv), w_spec(wo),
        w_spec(g1), w_spec(be1),
        w_spec(w1), w_spec(b1), w_spec(w2), w_spec(b2),
        w_spec(g2), w_spec(be2),
        const_spec(wp_pad), const_spec(bp_pad),
    ]

    out = pl.pallas_call(
        partial(fused_transformer_kernel, num_heads=num_heads),
        grid=(nb, L),
        in_specs=in_specs,
        out_specs=pl.BlockSpec((Bt, Hpad), lambda b, l: (b, 0)),
        out_shape=jax.ShapeDtypeStruct((B, Hpad), jnp.float32),
        scratch_shapes=[pltpu.VMEM((Bt * S, D), jnp.float32)],   # residual carry
        compiler_params=pltpu.CompilerParams(
            dimension_semantics=("parallel", "arbitrary"),
            # <= ~50 MiB: fits v7x (64 MiB physical) as well as v5e/v6e, with
            # headroom for the double-buffered per-layer weight blocks.
            vmem_limit_bytes=48 * 1024 * 1024,
        ),
    )(x, mrow, wq, wk, wv, wo, g1, be1, w1, b1, w2, b2, g2, be2, wp_pad, bp_pad)
    return out[:, :out_dim]


# ---------------------------------------------------------------------------
# Deterministic parameter init (PyTorch-like, stored as [in, out], stacked [L,...])
# ---------------------------------------------------------------------------
def init_params(key, D, H, num_layers):
    d_ff = 4 * D
    L = num_layers
    lim_d = 1.0 / math.sqrt(D)
    lim_f = 1.0 / math.sqrt(d_ff)
    ks = jax.random.split(key, 10)
    u = lambda k, shape, lim: jax.random.uniform(k, shape, jnp.float32, -lim, lim)
    wq = u(ks[0], (L, D, D), lim_d)
    wk = u(ks[1], (L, D, D), lim_d)
    wv = u(ks[2], (L, D, D), lim_d)
    wo = u(ks[3], (L, D, D), lim_d)
    w1 = u(ks[4], (L, D, d_ff), lim_d)
    b1 = u(ks[5], (L, 1, d_ff), lim_d)
    w2 = u(ks[6], (L, d_ff, D), lim_f)
    b2 = u(ks[7], (L, 1, D), lim_f)
    g1 = jnp.ones((L, 1, D), jnp.float32)
    be1 = jnp.zeros((L, 1, D), jnp.float32)
    g2 = jnp.ones((L, 1, D), jnp.float32)
    be2 = jnp.zeros((L, 1, D), jnp.float32)
    wp = u(ks[8], (D, H), lim_d)
    bp = u(ks[9], (1, H), lim_d)
    return (wq, wk, wv, wo, g1, be1, w1, b1, w2, b2, g2, be2, wp, bp)


# ---------------------------------------------------------------------------
# Pure-JAX f32 reference (same math as the PyTorch module) for a sanity check
# ---------------------------------------------------------------------------
def reference_forward(x, mask, params, num_heads):
    wq, wk, wv, wo, g1, be1, w1, b1, w2, b2, g2, be2, wp, bp = params
    B, S, D = x.shape
    L = wq.shape[0]
    dk = D // num_heads
    if mask is None:
        mask = jnp.ones((B, S), jnp.float32)
    mask2 = jnp.einsum("ab,ac->abc", mask, mask)                 # (B, S, S)
    h = x
    for li in range(L):
        hn = _layer_norm(h, g1[li], be1[li])
        q, k, v = hn @ wq[li], hn @ wk[li], hn @ wv[li]
        qh = q.reshape(B, S, num_heads, dk).transpose(0, 2, 1, 3)
        kh = k.reshape(B, S, num_heads, dk).transpose(0, 2, 1, 3)
        vh = v.reshape(B, S, num_heads, dk).transpose(0, 2, 1, 3)
        s = jnp.einsum("bhqd,bhkd->bhqk", qh, kh) / math.sqrt(dk)
        s = jnp.where(mask2[:, None] == 0, -1e9, s)
        p = jax.nn.softmax(s, axis=-1)
        p = jnp.where(mask2[:, None] == 0, 0.0, p)
        ctx = jnp.einsum("bhqk,bhkd->bhqd", p, vh)
        attn = ctx.transpose(0, 2, 1, 3).reshape(B, S, D) @ wo[li]
        h = h + attn
        hn2 = _layer_norm(h, g2[li], be2[li])
        f = _gelu_exact(hn2 @ w1[li] + b1[li]) @ w2[li] + b2[li]
        rv = jnp.sum(mask2, axis=-1, keepdims=True) > 0
        f = jnp.where(rv, f, 0.0)
        h = h + f
    out = h @ wp + bp
    return out[:, -1, :]


# ---------------------------------------------------------------------------
if __name__ == "__main__":
    B, S, D, H_DIM, HEADS, LAYERS = 2, 8, 32, 16, 4, 2
    key = jax.random.PRNGKey(0)
    kx, kp = jax.random.split(key)
    x = jax.random.normal(kx, (B, S, D), dtype=jnp.float32)
    # mask: 1 = valid, 0 = padding (second sequence has 3 padded positions,
    # including the last one -> exercises the masked-last-step select path)
    mask = jnp.array([[1.0] * S, [1.0] * 5 + [0.0] * (S - 5)], dtype=jnp.float32)

    params = init_params(kp, D, H_DIM, LAYERS)
    packed, out_dim = prepare_params(params)          # one-time bf16 cast / padding

    out = transformer_forward(x, mask, packed, HEADS, out_dim)
    out = jax.block_until_ready(out)

    ref = reference_forward(x, mask, params, HEADS)
    assert out.shape == (B, H_DIM), out.shape
    # bf16 MXU operands + approx reciprocal -> loosened tolerance vs f32 ref
    max_err = float(jnp.max(jnp.abs(out - ref)))
    assert jnp.allclose(out, ref, atol=5e-2, rtol=5e-2), max_err
    print("KERNEL_OK")
</pallas_src>

<mosaic_0001>
module attributes {stable_mosaic.version = 11 : i64} {
  func.func @fused_transformer_kernel(%arg0: i32, %arg1: i32, %arg2: memref<2x8x32xf32, #tpu.memory_space<vmem>>, %arg3: memref<2x1x8xf32, #tpu.memory_space<vmem>>, %arg4: memref<1x32x32xbf16, #tpu.memory_space<vmem>>, %arg5: memref<1x32x32xbf16, #tpu.memory_space<vmem>>, %arg6: memref<1x32x32xbf16, #tpu.memory_space<vmem>>, %arg7: memref<1x32x32xbf16, #tpu.memory_space<vmem>>, %arg8: memref<1x1x32xf32, #tpu.memory_space<vmem>>, %arg9: memref<1x1x32xf32, #tpu.memory_space<vmem>>, %arg10: memref<1x32x128xbf16, #tpu.memory_space<vmem>>, %arg11: memref<1x1x128xf32, #tpu.memory_space<vmem>>, %arg12: memref<1x128x32xbf16, #tpu.memory_space<vmem>>, %arg13: memref<1x1x32xf32, #tpu.memory_space<vmem>>, %arg14: memref<1x1x32xf32, #tpu.memory_space<vmem>>, %arg15: memref<1x1x32xf32, #tpu.memory_space<vmem>>, %arg16: memref<32x128xbf16, #tpu.memory_space<vmem>>, %arg17: memref<1x128xf32, #tpu.memory_space<vmem>>, %arg18: memref<2x128xf32, #tpu.memory_space<vmem>>, %arg19: memref<16x32xf32, #tpu.memory_space<vmem>>) attributes {dimension_semantics = [#tpu.dimension_semantics<parallel>, #tpu.dimension_semantics<arbitrary>], iteration_bounds = array<i64: 1, 2>, scalar_prefetch = 0 : i64, scratch_operands = 1 : i64, tpu.core_type = #tpu.core_type<tc>, window_params = [{transform_indices = @transform_0, window_bounds = array<i64: 2, 8, 32>}, {transform_indices = @transform_1, window_bounds = array<i64: 2, 1, 8>}, {transform_indices = @transform_2, window_bounds = array<i64: 1, 32, 32>}, {transform_indices = @transform_3, window_bounds = array<i64: 1, 32, 32>}, {transform_indices = @transform_4, window_bounds = array<i64: 1, 32, 32>}, {transform_indices = @transform_5, window_bounds = array<i64: 1, 32, 32>}, {transform_indices = @transform_6, window_bounds = array<i64: 1, 1, 32>}, {transform_indices = @transform_7, window_bounds = array<i64: 1, 1, 32>}, {transform_indices = @transform_8, window_bounds = array<i64: 1, 32, 128>}, {transform_indices = @transform_9, window_bounds = array<i64: 1, 1, 128>}, {transform_indices = @transform_10, window_bounds = array<i64: 1, 128, 32>}, {transform_indices = @transform_11, window_bounds = array<i64: 1, 1, 32>}, {transform_indices = @transform_12, window_bounds = array<i64: 1, 1, 32>}, {transform_indices = @transform_13, window_bounds = array<i64: 1, 1, 32>}, {pipeline_mode = #tpu.pipeline_mode<synchronous>, transform_indices = @transform_14, window_bounds = array<i64: 32, 128>}, {pipeline_mode = #tpu.pipeline_mode<synchronous>, transform_indices = @transform_15, window_bounds = array<i64: 1, 128>}, {transform_indices = @transform_16, window_bounds = array<i64: 2, 128>}]} {
    %c0_i32 = arith.constant 0 : i32
    %0 = arith.cmpi eq, %arg1, %c0_i32 : i32
    %1 = arith.extui %0 : i1 to i32
    %c0_i32_0 = arith.constant 0 : i32
    %2 = arith.cmpi ne, %1, %c0_i32_0 : i32
    scf.if %2 {
      %c0_70 = arith.constant 0 : index
      %c0_71 = arith.constant 0 : index
      %c0_72 = arith.constant 0 : index
      %139 = vector.load %arg2[%c0_70, %c0_71, %c0_72] : memref<2x8x32xf32, #tpu.memory_space<vmem>>, vector<2x8x32xf32>
      %140 = vector.shape_cast %139 : vector<2x8x32xf32> to vector<16x32xf32>
      %c0_73 = arith.constant 0 : index
      %c0_74 = arith.constant 0 : index
      %141 = vector.load %arg19[%c0_73, %c0_74] : memref<16x32xf32, #tpu.memory_space<vmem>>, vector<16x32xf32>
      tpu.vector_store %arg19[%c0_73, %c0_74], %140 {strides = array<i32>} : memref<16x32xf32, #tpu.memory_space<vmem>>, vector<16x32xf32>,
    } else {
    }
    %c0 = arith.constant 0 : index
    %c0_1 = arith.constant 0 : index
    %3 = vector.load %arg19[%c0, %c0_1] : memref<16x32xf32, #tpu.memory_space<vmem>>, vector<16x32xf32>
    %c0_2 = arith.constant 0 : index
    %c0_3 = arith.constant 0 : index
    %c0_4 = arith.constant 0 : index
    %4 = vector.load %arg3[%c0_2, %c0_3, %c0_4] : memref<2x1x8xf32, #tpu.memory_space<vmem>>, vector<2x1x8xf32>
    %cst = arith.constant 0.000000e+00 : f32
    %5 = vector.broadcast %cst : f32 to vector<2x1x8xf32>
    %6 = arith.cmpf oeq, %4, %5 : vector<2x1x8xf32>
    %cst_5 = arith.constant -1.000000e+09 : f32
    %cst_6 = arith.constant 0.000000e+00 : f32
    %7 = vector.broadcast %cst_5 : f32 to vector<2x1x8xf32>
    %8 = vector.broadcast %cst_6 : f32 to vector<2x1x8xf32>
    %9 = arith.select %6, %7, %8 : vector<2x1x8xi1>, vector<2x1x8xf32>
    %10 = tpu.concatenate %9, %9, %9, %9 in 0 : vector<2x1x8xf32>, vector<2x1x8xf32>, vector<2x1x8xf32>, vector<2x1x8xf32> -> vector<8x1x8xf32>
    %c0_7 = arith.constant 0 : index
    %c0_8 = arith.constant 0 : index
    %c0_9 = arith.constant 0 : index
    %11 = vector.load %arg8[%c0_7, %c0_8, %c0_9] : memref<1x1x32xf32, #tpu.memory_space<vmem>>, vector<1x1x32xf32>
    %12 = vector.shape_cast %11 : vector<1x1x32xf32> to vector<1x32xf32>
    %c0_10 = arith.constant 0 : index
    %c0_11 = arith.constant 0 : index
    %c0_12 = arith.constant 0 : index
    %13 = vector.load %arg9[%c0_10, %c0_11, %c0_12] : memref<1x1x32xf32, #tpu.memory_space<vmem>>, vector<1x1x32xf32>
    %14 = vector.shape_cast %13 : vector<1x1x32xf32> to vector<1x32xf32>
    %cst_13 = arith.constant dense<0.000000e+00> : vector<16xf32>
    %15 = vector.multi_reduction <add>, %3, %cst_13 [1] : vector<16x32xf32> to vector<16xf32>
    %16 = vector.shape_cast %15 : vector<16xf32> to vector<16x1xf32>
    %cst_14 = arith.constant 3.200000e+01 : f32
    %17 = vector.broadcast %cst_14 : f32 to vector<16x1xf32>
    %18 = arith.divf %16, %17 : vector<16x1xf32>
    %19 = vector.broadcast %18 : vector<16x1xf32> to vector<16x32xf32>
    %20 = arith.subf %3, %19 : vector<16x32xf32>
    %21 = arith.mulf %20, %20 : vector<16x32xf32>
    %cst_15 = arith.constant dense<0.000000e+00> : vector<16xf32>
    %22 = vector.multi_reduction <add>, %21, %cst_15 [1] : vector<16x32xf32> to vector<16xf32>
    %23 = vector.shape_cast %22 : vector<16xf32> to vector<16x1xf32>
    %cst_16 = arith.constant 3.200000e+01 : f32
    %24 = vector.broadcast %cst_16 : f32 to vector<16x1xf32>
    %25 = arith.divf %23, %24 : vector<16x1xf32>
    %26 = vector.broadcast %18 : vector<16x1xf32> to vector<16x32xf32>
    %27 = arith.subf %3, %26 : vector<16x32xf32>
    %cst_17 = arith.constant 9.99999974E-6 : f32
    %28 = vector.broadcast %cst_17 : f32 to vector<16x1xf32>
    %29 = arith.addf %25, %28 : vector<16x1xf32>
    %30 = math.rsqrt %29 : vector<16x1xf32>
    %31 = vector.broadcast %30 : vector<16x1xf32> to vector<16x32xf32>
    %32 = arith.mulf %27, %31 : vector<16x32xf32>
    %33 = vector.broadcast %12 : vector<1x32xf32> to vector<16x32xf32>
    %34 = arith.mulf %32, %33 : vector<16x32xf32>
    %35 = vector.broadcast %14 : vector<1x32xf32> to vector<16x32xf32>
    %36 = arith.addf %34, %35 : vector<16x32xf32>
    %37 = arith.truncf %36 : vector<16x32xf32> to vector<16x32xbf16>
    %c0_18 = arith.constant 0 : index
    %c0_19 = arith.constant 0 : index
    %c0_20 = arith.constant 0 : index
    %38 = vector.load %arg4[%c0_18, %c0_19, %c0_20] : memref<1x32x32xbf16, #tpu.memory_space<vmem>>, vector<1x32x32xbf16>
    %39 = vector.shape_cast %38 : vector<1x32x32xbf16> to vector<32x32xbf16>
    %cst_21 = arith.constant dense<0.000000e+00> : vector<16x32xf32>
    %40 = tpu.matmul %37, %39, %cst_21 {dimension_numbers = #tpu.dot_dimension_numbers<[1], [0], [0], [1], [0, 0, 1, 1], [], []>} : vector<16x32xbf16>, vector<32x32xbf16>, vector<16x32xf32> -> vector<16x32xf32>
    %c0_22 = arith.constant 0 : index
    %c0_23 = arith.constant 0 : index
    %c0_24 = arith.constant 0 : index
    %41 = vector.load %arg5[%c0_22, %c0_23, %c0_24] : memref<1x32x32xbf16, #tpu.memory_space<vmem>>, vector<1x32x32xbf16>
    %42 = vector.shape_cast %41 : vector<1x32x32xbf16> to vector<32x32xbf16>
    %cst_25 = arith.constant dense<0.000000e+00> : vector<16x32xf32>
    %43 = tpu.matmul %37, %42, %cst_25 {dimension_numbers = #tpu.dot_dimension_numbers<[1], [0], [0], [1], [0, 0, 1, 1], [], []>} : vector<16x32xbf16>, vector<32x32xbf16>, vector<16x32xf32> -> vector<16x32xf32>
    %c0_26 = arith.constant 0 : index
    %c0_27 = arith.constant 0 : index
    %c0_28 = arith.constant 0 : index
    %44 = vector.load %arg6[%c0_26, %c0_27, %c0_28] : memref<1x32x32xbf16, #tpu.memory_space<vmem>>, vector<1x32x32xbf16>
    %45 = vector.shape_cast %44 : vector<1x32x32xbf16> to vector<32x32xbf16>
    %cst_29 = arith.constant dense<0.000000e+00> : vector<16x32xf32>
    %46 = tpu.matmul %37, %45, %cst_29 {dimension_numbers = #tpu.dot_dimension_numbers<[1], [0], [0], [1], [0, 0, 1, 1], [], []>} : vector<16x32xbf16>, vector<32x32xbf16>, vector<16x32xf32> -> vector<16x32xf32>
    %47 = vector.shape_cast %40 : vector<16x32xf32> to vector<16x4x8xf32>
    %48 = tpu.transpose %47, [1, 0, 2] : vector<16x4x8xf32> -> vector<4x16x8xf32>
    %49 = vector.shape_cast %48 : vector<4x16x8xf32> to vector<8x8x8xf32>
    %50 = arith.truncf %49 : vector<8x8x8xf32> to vector<8x8x8xbf16>
    %51 = vector.shape_cast %43 : vector<16x32xf32> to vector<16x4x8xf32>
    %52 = tpu.transpose %51, [1, 0, 2] : vector<16x4x8xf32> -> vector<4x16x8xf32>
    %53 = vector.shape_cast %52 : vector<4x16x8xf32> to vector<8x8x8xf32>
    %54 = arith.truncf %53 : vector<8x8x8xf32> to vector<8x8x8xbf16>
    %55 = vector.shape_cast %46 : vector<16x32xf32> to vector<16x4x8xf32>
    %56 = tpu.transpose %55, [1, 0, 2] : vector<16x4x8xf32> -> vector<4x16x8xf32>
    %57 = vector.shape_cast %56 : vector<4x16x8xf32> to vector<8x8x8xf32>
    %58 = arith.truncf %57 : vector<8x8x8xf32> to vector<8x8x8xbf16>
    "tpu.trace_start"() <{level = 10 : i32, message = "bqd,bkd->bqk"}> : () -> ()
    %cst_30 = arith.constant dense<0.000000e+00> : vector<8x8x8xf32>
    %59 = tpu.matmul %50, %54, %cst_30 {dimension_numbers = #tpu.dot_dimension_numbers<[2], [2], [1], [1], [0, 0, 0, 1, 1, 1], [0], [0]>} : vector<8x8x8xbf16>, vector<8x8x8xbf16>, vector<8x8x8xf32> -> vector<8x8x8xf32>
    "tpu.trace_stop"() : () -> ()
    %cst_31 = arith.constant 0.353553385 : f32
    %60 = vector.broadcast %cst_31 : f32 to vector<8x8x8xf32>
    %61 = arith.mulf %59, %60 : vector<8x8x8xf32>
    %62 = vector.broadcast %10 : vector<8x1x8xf32> to vector<8x8x8xf32>
    %63 = arith.addf %61, %62 : vector<8x8x8xf32>
    %cst_32 = arith.constant dense<0xFF800000> : vector<8x8xf32>
    %64 = vector.multi_reduction <maximumf>, %63, %cst_32 [2] : vector<8x8x8xf32> to vector<8x8xf32>
    %65 = vector.shape_cast %64 : vector<8x8xf32> to vector<8x8x1xf32>
    %66 = vector.broadcast %65 : vector<8x8x1xf32> to vector<8x8x8xf32>
    %67 = arith.subf %63, %66 : vector<8x8x8xf32>
    %68 = math.exp %67 : vector<8x8x8xf32>
    %cst_33 = arith.constant dense<0.000000e+00> : vector<8x8xf32>
    %69 = vector.multi_reduction <add>, %68, %cst_33 [2] : vector<8x8x8xf32> to vector<8x8xf32>
    %70 = vector.shape_cast %69 : vector<8x8xf32> to vector<8x8x1xf32>
    %71 = tpu.reciprocal %70 {approx = true} : vector<8x8x1xf32> -> vector<8x8x1xf32>
    %72 = vector.broadcast %71 : vector<8x8x1xf32> to vector<8x8x8xf32>
    %73 = arith.mulf %68, %72 : vector<8x8x8xf32>
    %74 = arith.truncf %73 : vector<8x8x8xf32> to vector<8x8x8xbf16>
    "tpu.trace_start"() <{level = 10 : i32, message = "bqk,bkd->bqd"}> : () -> ()
    %cst_34 = arith.constant dense<0.000000e+00> : vector<8x8x8xf32>
    %75 = tpu.matmul %74, %58, %cst_34 {dimension_numbers = #tpu.dot_dimension_numbers<[2], [1], [1], [2], [0, 0, 0, 1, 1, 2], [0], [0]>} : vector<8x8x8xbf16>, vector<8x8x8xbf16>, vector<8x8x8xf32> -> vector<8x8x8xf32>
    "tpu.trace_stop"() : () -> ()
    %76 = vector.shape_cast %75 : vector<8x8x8xf32> to vector<4x16x8xf32>
    %77 = tpu.transpose %76, [1, 0, 2] : vector<4x16x8xf32> -> vector<16x4x8xf32>
    %78 = vector.shape_cast %77 : vector<16x4x8xf32> to vector<16x32xf32>
    %79 = arith.truncf %78 : vector<16x32xf32> to vector<16x32xbf16>
    %c0_35 = arith.constant 0 : index
    %c0_36 = arith.constant 0 : index
    %c0_37 = arith.constant 0 : index
    %80 = vector.load %arg7[%c0_35, %c0_36, %c0_37] : memref<1x32x32xbf16, #tpu.memory_space<vmem>>, vector<1x32x32xbf16>
    %81 = vector.shape_cast %80 : vector<1x32x32xbf16> to vector<32x32xbf16>
    %cst_38 = arith.constant dense<0.000000e+00> : vector<16x32xf32>
    %82 = tpu.matmul %79, %81, %cst_38 {dimension_numbers = #tpu.dot_dimension_numbers<[1], [0], [0], [1], [0, 0, 1, 1], [], []>} : vector<16x32xbf16>, vector<32x32xbf16>, vector<16x32xf32> -> vector<16x32xf32>
    %83 = arith.addf %3, %82 : vector<16x32xf32>
    %c0_39 = arith.constant 0 : index
    %c0_40 = arith.constant 0 : index
    %c0_41 = arith.constant 0 : index
    %84 = vector.load %arg14[%c0_39, %c0_40, %c0_41] : memref<1x1x32xf32, #tpu.memory_space<vmem>>, vector<1x1x32xf32>
    %85 = vector.shape_cast %84 : vector<1x1x32xf32> to vector<1x32xf32>
    %c0_42 = arith.constant 0 : index
    %c0_43 = arith.constant 0 : index
    %c0_44 = arith.constant 0 : index
    %86 = vector.load %arg15[%c0_42, %c0_43, %c0_44] : memref<1x1x32xf32, #tpu.memory_space<vmem>>, vector<1x1x32xf32>
    %87 = vector.shape_cast %86 : vector<1x1x32xf32> to vector<1x32xf32>
    %cst_45 = arith.constant dense<0.000000e+00> : vector<16xf32>
    %88 = vector.multi_reduction <add>, %83, %cst_45 [1] : vector<16x32xf32> to vector<16xf32>
    %89 = vector.shape_cast %88 : vector<16xf32> to vector<16x1xf32>
    %cst_46 = arith.constant 3.200000e+01 : f32
    %90 = vector.broadcast %cst_46 : f32 to vector<16x1xf32>
    %91 = arith.divf %89, %90 : vector<16x1xf32>
    %92 = vector.broadcast %91 : vector<16x1xf32> to vector<16x32xf32>
    %93 = arith.subf %83, %92 : vector<16x32xf32>
    %94 = arith.mulf %93, %93 : vector<16x32xf32>
    %cst_47 = arith.constant dense<0.000000e+00> : vector<16xf32>
    %95 = vector.multi_reduction <add>, %94, %cst_47 [1] : vector<16x32xf32> to vector<16xf32>
    %96 = vector.shape_cast %95 : vector<16xf32> to vector<16x1xf32>
    %cst_48 = arith.constant 3.200000e+01 : f32
    %97 = vector.broadcast %cst_48 : f32 to vector<16x1xf32>
    %98 = arith.divf %96, %97 : vector<16x1xf32>
    %99 = vector.broadcast %91 : vector<16x1xf32> to vector<16x32xf32>
    %100 = arith.subf %83, %99 : vector<16x32xf32>
    %cst_49 = arith.constant 9.99999974E-6 : f32
    %101 = vector.broadcast %cst_49 : f32 to vector<16x1xf32>
    %102 = arith.addf %98, %101 : vector<16x1xf32>
    %103 = math.rsqrt %102 : vector<16x1xf32>
    %104 = vector.broadcast %103 : vector<16x1xf32> to vector<16x32xf32>
    %105 = arith.mulf %100, %104 : vector<16x32xf32>
    %106 = vector.broadcast %85 : vector<1x32xf32> to vector<16x32xf32>
    %107 = arith.mulf %105, %106 : vector<16x32xf32>
    %108 = vector.broadcast %87 : vector<1x32xf32> to vector<16x32xf32>
    %109 = arith.addf %107, %108 : vector<16x32xf32>
    %110 = arith.truncf %109 : vector<16x32xf32> to vector<16x32xbf16>
    %c0_50 = arith.constant 0 : index
    %c0_51 = arith.constant 0 : index
    %c0_52 = arith.constant 0 : index
    %111 = vector.load %arg10[%c0_50, %c0_51, %c0_52] : memref<1x32x128xbf16, #tpu.memory_space<vmem>>, vector<1x32x128xbf16>
    %112 = vector.shape_cast %111 : vector<1x32x128xbf16> to vector<32x128xbf16>
    %cst_53 = arith.constant dense<0.000000e+00> : vector<16x128xf32>
    %113 = tpu.matmul %110, %112, %cst_53 {dimension_numbers = #tpu.dot_dimension_numbers<[1], [0], [0], [1], [0, 0, 1, 1], [], []>} : vector<16x32xbf16>, vector<32x128xbf16>, vector<16x128xf32> -> vector<16x128xf32>
    %c0_54 = arith.constant 0 : index
    %c0_55 = arith.constant 0 : index
    %c0_56 = arith.constant 0 : index
    %114 = vector.load %arg11[%c0_54, %c0_55, %c0_56] : memref<1x1x128xf32, #tpu.memory_space<vmem>>, vector<1x1x128xf32>
    %115 = vector.shape_cast %114 : vector<1x1x128xf32> to vector<1x128xf32>
    %116 = vector.broadcast %115 : vector<1x128xf32> to vector<16x128xf32>
    %117 = arith.addf %113, %116 : vector<16x128xf32>
    %cst_57 = arith.constant 5.000000e-01 : f32
    %118 = vector.broadcast %cst_57 : f32 to vector<16x128xf32>
    %119 = arith.mulf %118, %117 : vector<16x128xf32>
    %cst_58 = arith.constant 0.707106769 : f32
    %120 = vector.broadcast %cst_58 : f32 to vector<16x128xf32>
    %121 = arith.mulf %117, %120 : vector<16x128xf32>
    %122 = math.erf %121 : vector<16x128xf32>
    %cst_59 = arith.constant 1.000000e+00 : f32
    %123 = vector.broadcast %cst_59 : f32 to vector<16x128xf32>
    %124 = arith.addf %123, %122 : vector<16x128xf32>
    %125 = arith.mulf %119, %124 : vector<16x128xf32>
    %126 = arith.truncf %125 : vector<16x128xf32> to vector<16x128xbf16>
    %c0_60 = arith.constant 0 : index
    %c0_61 = arith.constant 0 : index
    %c0_62 = arith.constant 0 : index
    %127 = vector.load %arg12[%c0_60, %c0_61, %c0_62] : memref<1x128x32xbf16, #tpu.memory_space<vmem>>, vector<1x128x32xbf16>
    %128 = vector.shape_cast %127 : vector<1x128x32xbf16> to vector<128x32xbf16>
    %cst_63 = arith.constant dense<0.000000e+00> : vector<16x32xf32>
    %129 = tpu.matmul %126, %128, %cst_63 {dimension_numbers = #tpu.dot_dimension_numbers<[1], [0], [0], [1], [0, 0, 1, 1], [], []>} : vector<16x128xbf16>, vector<128x32xbf16>, vector<16x32xf32> -> vector<16x32xf32>
    %c0_64 = arith.constant 0 : index
    %c0_65 = arith.constant 0 : index
    %c0_66 = arith.constant 0 : index
    %130 = vector.load %arg13[%c0_64, %c0_65, %c0_66] : memref<1x1x32xf32, #tpu.memory_space<vmem>>, vector<1x1x32xf32>
    %131 = vector.shape_cast %130 : vector<1x1x32xf32> to vector<1x32xf32>
    %132 = vector.broadcast %131 : vector<1x32xf32> to vector<16x32xf32>
    %133 = arith.addf %129, %132 : vector<16x32xf32>
    %134 = arith.addf %83, %133 : vector<16x32xf32>
    %c0_67 = arith.constant 0 : index
    %c0_68 = arith.constant 0 : index
    %135 = vector.load %arg19[%c0_67, %c0_68] : memref<16x32xf32, #tpu.memory_space<vmem>>, vector<16x32xf32>
    tpu.vector_store %arg19[%c0_67, %c0_68], %134 {strides = array<i32>} : memref<16x32xf32, #tpu.memory_space<vmem>>, vector<16x32xf32>,
    %c1_i32 = arith.constant 1 : i32
    %136 = arith.cmpi eq, %arg1, %c1_i32 : i32
    %137 = arith.extui %136 : i1 to i32
    %c0_i32_69 = arith.constant 0 : i32
    %138 = arith.cmpi ne, %137, %c0_i32_69 : i32
    scf.if %138 {
      %139 = vector.shape_cast %134 : vector<16x32xf32> to vector<2x8x32xf32>
      %c0_70 = arith.constant 0 : index
      %c0_71 = arith.constant 0 : index
      %c0_72 = arith.constant 0 : index
      %140 = vector.load %arg2[%c0_70, %c0_71, %c0_72] : memref<2x8x32xf32, #tpu.memory_space<vmem>>, vector<2x8x32xf32>
      %141 = vector.extract_strided_slice %4 {offsets = [0, 0, 7], sizes = [2, 1, 1], strides = [1, 1, 1]} : vector<2x1x8xf32> to vector<2x1x1xf32>
      %142 = vector.shape_cast %141 : vector<2x1x1xf32> to vector<2x1xf32>
      %cst_73 = arith.constant 0.000000e+00 : f32
      %143 = vector.broadcast %cst_73 : f32 to vector<2x1xf32>
      %144 = arith.cmpf ogt, %142, %143 : vector<2x1xf32>
      %145 = vector.extract_strided_slice %139 {offsets = [0, 7, 0], sizes = [2, 1, 32], strides = [1, 1, 1]} : vector<2x8x32xf32> to vector<2x1x32xf32>
      %146 = vector.shape_cast %145 : vector<2x1x32xf32> to vector<2x32xf32>
      %147 = vector.extract_strided_slice %140 {offsets = [0, 7, 0], sizes = [2, 1, 32], strides = [1, 1, 1]} : vector<2x8x32xf32> to vector<2x1x32xf32>
      %148 = vector.shape_cast %147 : vector<2x1x32xf32> to vector<2x32xf32>
      %149 = vector.shape_cast %144 : vector<2x1xi1> to vector<2x1xi1>
      %150 = vector.broadcast %149 : vector<2x1xi1> to vector<2x32xi1>
      %151 = arith.select %150, %146, %148 : vector<2x32xi1>, vector<2x32xf32>
      %152 = arith.truncf %151 : vector<2x32xf32> to vector<2x32xbf16>
      %c0_74 = arith.constant 0 : index
      %c0_75 = arith.constant 0 : index
      %153 = vector.load %arg16[%c0_74, %c0_75] : memref<32x128xbf16, #tpu.memory_space<vmem>>, vector<32x128xbf16>
      %cst_76 = arith.constant dense<0.000000e+00> : vector<2x128xf32>
      %154 = tpu.matmul %152, %153, %cst_76 {dimension_numbers = #tpu.dot_dimension_numbers<[1], [0], [0], [1], [0, 0, 1, 1], [], []>} : vector<2x32xbf16>, vector<32x128xbf16>, vector<2x128xf32> -> vector<2x128xf32>
      %c0_77 = arith.constant 0 : index
      %c0_78 = arith.constant 0 : index
      %155 = vector.load %arg17[%c0_77, %c0_78] : memref<1x128xf32, #tpu.memory_space<vmem>>, vector<1x128xf32>
      %156 = vector.broadcast %155 : vector<1x128xf32> to vector<2x128xf32>
      %157 = arith.addf %154, %156 : vector<2x128xf32>
      %c0_79 = arith.constant 0 : index
      %c0_80 = arith.constant 0 : index
      %158 = vector.load %arg18[%c0_79, %c0_80] : memref<2x128xf32, #tpu.memory_space<vmem>>, vector<2x128xf32>
      tpu.vector_store %arg18[%c0_79, %c0_80], %157 {strides = array<i32>} : memref<2x128xf32, #tpu.memory_space<vmem>>, vector<2x128xf32>,
    } else {
    }
    return
  }
  func.func @transform_0(%arg0: i32, %arg1: i32) -> (i32, i32, i32) {
    %c0_i32 = arith.constant 0 : i32
    %c0_i32_0 = arith.constant 0 : i32
    %c0_i32_1 = arith.constant 0 : i32
    return %arg0, %c0_i32, %c0_i32_0 : i32, i32, i32
  }
  func.func @transform_1(%arg0: i32, %arg1: i32) -> (i32, i32, i32) {
    %c0_i32 = arith.constant 0 : i32
    %c0_i32_0 = arith.constant 0 : i32
    %c0_i32_1 = arith.constant 0 : i32
    return %arg0, %c0_i32, %c0_i32_0 : i32, i32, i32
  }
  func.func @transform_2(%arg0: i32, %arg1: i32) -> (i32, i32, i32) {
    %c0_i32 = arith.constant 0 : i32
    %c0_i32_0 = arith.constant 0 : i32
    %c0_i32_1 = arith.constant 0 : i32
    return %arg1, %c0_i32, %c0_i32_0 : i32, i32, i32
  }
  func.func @transform_3(%arg0: i32, %arg1: i32) -> (i32, i32, i32) {
    %c0_i32 = arith.constant 0 : i32
    %c0_i32_0 = arith.constant 0 : i32
    %c0_i32_1 = arith.constant 0 : i32
    return %arg1, %c0_i32, %c0_i32_0 : i32, i32, i32
  }
  func.func @transform_4(%arg0: i32, %arg1: i32) -> (i32, i32, i32) {
    %c0_i32 = arith.constant 0 : i32
    %c0_i32_0 = arith.constant 0 : i32
    %c0_i32_1 = arith.constant 0 : i32
    return %arg1, %c0_i32, %c0_i32_0 : i32, i32, i32
  }
  func.func @transform_5(%arg0: i32, %arg1: i32) -> (i32, i32, i32) {
    %c0_i32 = arith.constant 0 : i32
    %c0_i32_0 = arith.constant 0 : i32
    %c0_i32_1 = arith.constant 0 : i32
    return %arg1, %c0_i32, %c0_i32_0 : i32, i32, i32
  }
  func.func @transform_6(%arg0: i32, %arg1: i32) -> (i32, i32, i32) {
    %c0_i32 = arith.constant 0 : i32
    %c0_i32_0 = arith.constant 0 : i32
    %c0_i32_1 = arith.constant 0 : i32
    return %arg1, %c0_i32, %c0_i32_0 : i32, i32, i32
  }
  func.func @transform_7(%arg0: i32, %arg1: i32) -> (i32, i32, i32) {
    %c0_i32 = arith.constant 0 : i32
    %c0_i32_0 = arith.constant 0 : i32
    %c0_i32_1 = arith.constant 0 : i32
    return %arg1, %c0_i32, %c0_i32_0 : i32, i32, i32
  }
  func.func @transform_8(%arg0: i32, %arg1: i32) -> (i32, i32, i32) {
    %c0_i32 = arith.constant 0 : i32
    %c0_i32_0 = arith.constant 0 : i32
    %c0_i32_1 = arith.constant 0 : i32
    return %arg1, %c0_i32, %c0_i32_0 : i32, i32, i32
  }
  func.func @transform_9(%arg0: i32, %arg1: i32) -> (i32, i32, i32) {
    %c0_i32 = arith.constant 0 : i32
    %c0_i32_0 = arith.constant 0 : i32
    %c0_i32_1 = arith.constant 0 : i32
    return %arg1, %c0_i32, %c0_i32_0 : i32, i32, i32
  }
  func.func @transform_10(%arg0: i32, %arg1: i32) -> (i32, i32, i32) {
    %c0_i32 = arith.constant 0 : i32
    %c0_i32_0 = arith.constant 0 : i32
    %c0_i32_1 = arith.constant 0 : i32
    return %arg1, %c0_i32, %c0_i32_0 : i32, i32, i32
  }
  func.func @transform_11(%arg0: i32, %arg1: i32) -> (i32, i32, i32) {
    %c0_i32 = arith.constant 0 : i32
    %c0_i32_0 = arith.constant 0 : i32
    %c0_i32_1 = arith.constant 0 : i32
    return %arg1, %c0_i32, %c0_i32_0 : i32, i32, i32
  }
  func.func @transform_12(%arg0: i32, %arg1: i32) -> (i32, i32, i32) {
    %c0_i32 = arith.constant 0 : i32
    %c0_i32_0 = arith.constant 0 : i32
    %c0_i32_1 = arith.constant 0 : i32
    return %arg1, %c0_i32, %c0_i32_0 : i32, i32, i32
  }
  func.func @transform_13(%arg0: i32, %arg1: i32) -> (i32, i32, i32) {
    %c0_i32 = arith.constant 0 : i32
    %c0_i32_0 = arith.constant 0 : i32
    %c0_i32_1 = arith.constant 0 : i32
    return %arg1, %c0_i32, %c0_i32_0 : i32, i32, i32
  }
  func.func @transform_14(%arg0: i32, %arg1: i32) -> (i32, i32) {
    %c0_i32 = arith.constant 0 : i32
    %c0_i32_0 = arith.constant 0 : i32
    %c0_i32_1 = arith.constant 0 : i32
    return %c0_i32, %c0_i32_0 : i32, i32
  }
  func.func @transform_15(%arg0: i32, %arg1: i32) -> (i32, i32) {
    %c0_i32 = arith.constant 0 : i32
    %c0_i32_0 = arith.constant 0 : i32
    %c0_i32_1 = arith.constant 0 : i32
    return %c0_i32, %c0_i32_0 : i32, i32
  }
  func.func @transform_16(%arg0: i32, %arg1: i32) -> (i32, i32) {
    %c0_i32 = arith.constant 0 : i32
    %c0_i32_0 = arith.constant 0 : i32
    return %arg0, %c0_i32 : i32, i32
  }
}

</mosaic_0001>

<bundles_post_ra>
// kernel: tpu_custom_call.1
= control target key start
LH: loop header
LB: loop body
LE: loop exit
PB: predicated region body
PF: predicated region fallthrough
CT: control target
= control target key end

     0   :  { %s5766_s0 = inlined_call_operand.hbm [shape: f32[2,8,32], index: 0, kind: input, shape index: {}]   ;;  %s5767_s1 = inlined_call_operand.hbm [shape: f32[2,1,8], index: 1, kind: input, shape index: {}]   ;;  %s5768_s2 = inlined_call_operand.vmem [shape: bf16[2,32,32], index: 2, kind: input, shape index: {}]   ;;  %s5769_s3 = inlined_call_operand.vmem [shape: bf16[2,32,32], index: 3, kind: input, shape index: {}]   ;;  %s5770_s4 = inlined_call_operand.vmem [shape: bf16[2,32,32], index: 4, kind: input, shape index: {}]   ;;  %s5771_s5 = inlined_call_operand.vmem [shape: bf16[2,32,32], index: 5, kind: input, shape index: {}]   ;;  %s5772_s6 = inlined_call_operand.hbm [shape: f32[2,1,32], index: 6, kind: input, shape index: {}]   ;;  %s5773_s7 = inlined_call_operand.hbm [shape: f32[2,1,32], index: 7, kind: input, shape index: {}]   ;;  %s5774_s8 = inlined_call_operand.vmem [shape: bf16[2,32,128], index: 8, kind: input, shape index: {}]   ;;  %s5775_s9 = inlined_call_operand.hbm [shape: f32[2,1,128], index: 9, kind: input, shape index: {}]   ;;  %s5776_s10 = inlined_call_operand.vmem [shape: bf16[2,128,32], index: 10, kind: input, shape index: {}]   ;;  %s5777_s11 = inlined_call_operand.hbm [shape: f32[2,1,32], index: 11, kind: input, shape index: {}]   ;;  %s5778_s12 = inlined_call_operand.hbm [shape: f32[2,1,32], index: 12, kind: input, shape index: {}]   ;;  %s5779_s13 = inlined_call_operand.hbm [shape: f32[2,1,32], index: 13, kind: input, shape index: {}]   ;;  %s5780_s14 = inlined_call_operand.vmem [shape: bf16[32,128], index: 14, kind: input, shape index: {}]   ;;  %s5781_s15 = inlined_call_operand.vmem [shape: f32[1,128], index: 15, kind: input, shape index: {}]   ;;  %s5782_s16 = inlined_call_operand.hbm [shape: f32[2,128], index: 16, kind: output, shape index: {}]  }
   0x1   :  { %5802 = sst [smem:[#allocation24_spill]] %s5766_s0 }
   0x2   :  { %5803 = sst [smem:[#allocation25_spill]] %s5767_s1 }
   0x3   :  { %5804 = sst [smem:[#allocation26_spill]] %s5768_s2 }
   0x4   :  { %5805 = sst [smem:[#allocation27_spill]] %s5769_s3 }
   0x5   :  { %5806 = sst [smem:[#allocation28_spill]] %s5770_s4 }
   0x6   :  { %5807 = sst [smem:[#allocation29_spill]] %s5771_s5 }
   0x7   :  { %5808 = sst [smem:[#allocation30_spill]] %s5772_s6 }
   0x8   :  { %5809 = sst [smem:[#allocation31_spill]] %s5774_s8 }
   0x9   :  { %5810 = sst [smem:[#allocation32_spill]] %s5776_s10 }
   0xa   :  { %5811 = sst [smem:[#allocation33_spill]] %s5780_s14 }
   0xb   :  { %5812 = sst [smem:[#allocation34_spill]] %s5781_s15 }
   0xc   :  { %5813 = sst [smem:[#allocation35_spill]] %s5782_s16 }
   0xd   :  { %21 = vsyncpa [#allocation4], 0 }
   0xe   :  { %22 = vsyncpa [#allocation7], 0 }
   0xf   :  { %23 = vsyncpa [#allocation5], 0  ;;  %s4879_s21 = smov 0   ;;  %s4881_s22 = smov 0  }
  0x10   :  { %s4883_s23 = smov 0   ;;  %s4885_s24 = smov 0  }
  0x11   :  { %s4887_s25 = smov 0   ;;  %s4889_s26 = smov 0  }
  0x12 LB: > { %5814 = sst [smem:[#allocation19_spill]] %s4752_s23  ;;  %s4908_s27 = sadd.s32 4294967295, %s4764_s26   ;;  %s4764_s26 = sphi %s4889_s26, %s29_s26   ;;  %s4760_s25 = sphi %s4887_s25, %s5857_s25   ;;  %s4756_s24 = sphi %s4885_s24, %s5856_s24   ;;  %s4752_s23 = sphi %s4883_s23, %s5855_s23   ;;  %s4748_s22 = sphi %s4881_s22, %s5859_s22   ;;  %s4744_s21 = sphi %s4879_s21, %s5858_s21  }
  0x13   : > { %5815 = sst [smem:[#allocation20_spill]] %s4760_s25  ;;  %p211_p0 = scmp.ne.s32.totalorder %s4752_s23, %s4748_s22 }
  0x14   : > { %5816 = sst [smem:[#allocation21_spill]] %s4764_s26  ;;  %p212_p1 = scmp.eq.s32.totalorder %s4764_s26, 0 }
  0x15   : > { %p217_p2 = scmp.ne.s32.totalorder %s4748_s22, %s4744_s21  ;;  %p5786_p3 = scmp.eq.s32.totalorder %s4908_s27, 0 }
  0x16   : > { %p213_p4 = por %p212_p1, %p211_p0  ;;  %p3904_p5 = scmp.ge.s32.totalorder %s4764_s26, 1 }
  0x17   : > { %p4919_p6 = por %p5786_p3, %p217_p2  ;;  %p478_p7 = scmp.lt.s32.totalorder %s4764_s26, 3 }
  0x18   : > { %s4766_s0 = smov [#allocation3]   ;;  %p4281_p10 = scmp.lt.s32.totalorder %s4764_s26, 2 }
  0x19   : > { %s5817_s29 = scalar_select %p4919_p6, 1, 0 }
  0x1a   : > { %p4924_p8 = pnand %p3904_p5, %p478_p7  ;;  %s493_s17 = sshll.u32 %s4766_s0, 4  ;;  %s494_s17 = int_to_ptr.vmem [resolvable:$true] %s493_s17 }
  0x1b   : > { %p4937_p12 = pnand %p4281_p10, %p213_p4  ;;  %s38_s20 = sadd.s32 1, %s4760_s25 }
  0x1c   : > { %s5818_s30 = scalar_select %p4924_p8, 1, 0 }
  0x1d   : > { %p4253_p9 = pneg %p4924_p8  ;;  %s5821_s16 = sld [smem:[#allocation24_spill]] }
  0x1e   : > { %s5820_s19 = scalar_select %p4937_p12, 1, 0 }
  0x1f   : > { %p4933_p11 = pnand %p4253_p9, %p5786_p3 }
  0x21   : > { %s5819_s18 = scalar_select %p4933_p11, 1, 0 }
  0x22   : > { %p5793_p0 = pneg %p4933_p11 }
  0x23   : > { %s4440_s0 = scalar_lea.hbm %s5821_s16, 256 }
  0x24   : > { %p4441_p13 = scmp.ne.s32.totalorder %s5821_s16, %s4440_s0  ;;  %p4447_p4 = scmp.lt.u32.totalorder %s4440_s0, %s5821_s16 }
  0x26   : > { %p4443_p1 = pnand %p5793_p0, %p4441_p13 }
  0x28   : > { %p4444_p2 = pneg %p4443_p1 }
  0x2a   : > { %p4449_p5 = pnand %p4447_p4, %p4444_p2 }
  0x2c   : > { %4452 = shalt.err (!%p4449_p5)
}
  0x2d   : > { %s4453_s5 = scalar_lea.vmem %s494_s17, 256  ;;  %p4461_p3 = scmp.lt.s32.totalorder %s494_s17, %s494_s17 }
  0x2e   : > { %p4454_p7 = scmp.ne.s32.totalorder %s494_s17, %s4453_s5  ;;  %p4462_p6 = scmp.lt.s32.totalorder %s4453_s5, %s4453_s5 }
  0x30   : > { %p4456_p9 = pnand %p4454_p7, %p5793_p0  ;;  %p4463_p8 = por %p4462_p6, %p4461_p3 }
  0x32   : > { %p4457_p10 = pneg %p4456_p9 }
  0x34   : > { %p4464_p12 = pnand %p4463_p8, %p4457_p10 }
  0x36   : > { %4467 = shalt.err (!%p4464_p12)
}
  0x37   : > { %s4767_s14 = smov 128   ;;  %s4768_s8 = smov 8  }
  0x38   : > { %4256 = dma.hbm_to_vmem [thread:$0]  (!%p4933_p11), %s5821_s16, 256, %s494_s17, [#allocation4], %s4767_s14, %s4767_s14, %s4768_s8  }
  0x39   : > { %p39_p13 = scmp.ge.s32.totalorder %s38_s20, 2  ;;  %s561_s5 = sand.u32 1, %s4764_s26  }
  0x3a   : > { %s4966_s28 = sand.u32 1, %s4752_s23   ;;  %s4973_s0 = sshll.u32 %s4760_s25, 4 }
  0x3b   : > { %s5861_s20 = smov (%p39_p13, %s38_s20), 0  ;;  %s5823_s6 = sld [smem:[#allocation30_spill]] }
  0x3c   : > { %5822 = sst [smem:[#allocation22_spill]] %s5861_s20  ;;  %s201_s21 = ssub.s32 %s4760_s25, %s5861_s20 }
  0x3d   : > { %p202_p3 = scmp.eq.s32.totalorder %s201_s21, 0  ;;  %s564_s17 = scalar_lea.vmem [#allocation8], %s4966_s28 }
  0x3e   : > { %s571_s14 = sshll.u32 %s564_s17, 4  ;;  %s5824_s8 = sadd.s32 1, %s4752_s23  ;;  %s4987_s14 = int_to_ptr.vmem [resolvable:$true] %s571_s14 }
  0x3f   : > { %s4985_s15 = scalar_select %p202_p3, %s4752_s23, %s5824_s8  }
  0x40   : > { %s4993_s21 = scalar_lea.hbm %s5773_s7, %s4973_s0  ;;  %s4995_s25 = scalar_lea.sflag [#allocation4], %s561_s5 }
  0x41   : > { %s4979_s10 = scalar_lea.hbm %s5823_s6, %s4973_s0  ;;  %5825 = sst [smem:[#allocation23_spill]] %s4985_s15 }
  0x42   : > { %s4468_s3 = scalar_lea.hbm %s4979_s10, 16  ;;  %p5826_p8 = scmp.ne.s32.totalorder %s5820_s19, 0 }
  0x43   : > { %p4469_p6 = scmp.ne.s32.totalorder %s4979_s10, %s4468_s3  ;;  %s4473_s15 = scalar_lea.hbm %s5823_s6, 32 }
  0x44   : > { %p5001_p12 = pneg %p5826_p8  ;;  %p4474_p4 = scmp.lt.u32.totalorder %s4979_s10, %s5823_s6 }
  0x45   : > { %p4475_p5 = scmp.lt.u32.totalorder %s4473_s15, %s4468_s3  ;;  %p4477_p9 = scmp.lt.u32.totalorder %s4468_s3, %s4979_s10 }
  0x46   : > { %s5827_s4 = scalar_select %p5001_p12, 1, 0 }
  0x47   : > { %p4471_p1 = pnand %p5001_p12, %p4469_p6  ;;  %p4476_p7 = por %p4475_p5, %p4474_p4 }
  0x49   : > { %p4472_p2 = pneg %p4471_p1  ;;  %p4478_p10 = por %p4477_p9, %p4476_p7 }
  0x4b   : > { %p4479_p13 = pnand %p4478_p10, %p4472_p2 }
  0x4d   : > { %4482 = shalt.err (!%p4479_p13)
}
  0x4e   : > { %s4483_s5 = scalar_lea.vmem %s4987_s14, 16  ;;  %s4769_s17 = smov [#allocation8]  }
  0x4f   : > { %p4484_p3 = scmp.ne.s32.totalorder %s4987_s14, %s4483_s5  ;;  %s4488_s8 = sshll.u32 %s4769_s17, 4  ;;  %s4489_s8 = int_to_ptr.vmem [resolvable:$false] %s4488_s8 }
  0x50   : > { %s4490_s16 = scalar_lea.vmem %s4489_s8, 32  ;;  %p4491_p0 = scmp.lt.s32.totalorder %s4987_s14, %s4489_s8 }
  0x51   : > { %p4486_p6 = pnand %p4484_p3, %p5001_p12  ;;  %p4492_p11 = scmp.lt.s32.totalorder %s4490_s16, %s4483_s5 }
  0x53   : > { %p4487_p1 = pneg %p4486_p6  ;;  %p4493_p4 = por %p4492_p11, %p4491_p0 }
  0x55   : > { %p4494_p5 = pnand %p4493_p4, %p4487_p1 }
  0x57   : > { %4497 = shalt.err (!%p4494_p5)
}
  0x58   : > { %4263 = dma.hbm_to_vmem [thread:$0]  (!%p5826_p8), %s4979_s10, 16, %s4987_s14, %s4995_s25  }
  0x59   : > { %s581_s15 = scalar_lea.vmem [#allocation9], %s4966_s28  ;;  %s5030_s17 = scalar_lea.hbm %s5775_s9, %s4973_s0 }
  0x5a   : > { %s588_s3 = sshll.u32 %s581_s15, 4  ;;  %s4498_s8 = scalar_lea.hbm %s4993_s21, 16  ;;  %s589_s3 = int_to_ptr.vmem [resolvable:$true] %s588_s3 }
  0x5b   : > { %p4499_p11 = scmp.ne.s32.totalorder %s4993_s21, %s4498_s8  ;;  %s4503_s23 = scalar_lea.hbm %s5773_s7, 32 }
  0x5c   : > { %p4504_p7 = scmp.lt.u32.totalorder %s4993_s21, %s5773_s7  ;;  %p4505_p9 = scmp.lt.u32.totalorder %s4503_s23, %s4498_s8 }
  0x5d   : > { %p4501_p0 = pnand %p4499_p11, %p5001_p12  ;;  %p4507_p13 = scmp.lt.u32.totalorder %s4498_s8, %s4993_s21 }
  0x5e   : > { %p4506_p10 = por %p4505_p9, %p4504_p7 }
  0x5f   : > { %p4502_p2 = pneg %p4501_p0 }
  0x60   : > { %p4508_p3 = por %p4507_p13, %p4506_p10 }
  0x62   : > { %p4509_p6 = pnand %p4508_p3, %p4502_p2 }
  0x64   : > { %4512 = shalt.err (!%p4509_p6)
}
  0x65   : > { %s4513_s10 = scalar_lea.vmem %s589_s3, 16  ;;  %s4770_s14 = smov [#allocation9]  }
  0x66   : > { %p4514_p1 = scmp.ne.s32.totalorder %s589_s3, %s4513_s10  ;;  %s4518_s15 = sshll.u32 %s4770_s14, 4  ;;  %s4519_s15 = int_to_ptr.vmem [resolvable:$false] %s4518_s15 }
  0x67   : > { %s4520_s6 = scalar_lea.vmem %s4519_s15, 32  ;;  %p4521_p11 = scmp.lt.s32.totalorder %s589_s3, %s4519_s15 }
  0x68   : > { %p4516_p4 = pnand %p4514_p1, %p5001_p12  ;;  %p4522_p0 = scmp.lt.s32.totalorder %s4520_s6, %s4513_s10 }
  0x6a   : > { %p4517_p5 = pneg %p4516_p4  ;;  %p4523_p8 = por %p4522_p0, %p4521_p11 }
  0x6c   : > { %p4524_p7 = pnand %p4523_p8, %p4517_p5 }
  0x6e   : > { %4527 = shalt.err (!%p4524_p7)
}
  0x6f   : > { %p5828_p9 = scmp.ne.s32.totalorder %s5820_s19, 0  ;;  %s606_s2 = scalar_lea.vmem [#allocation10], %s4966_s28 }
  0x70   : > { %s613_s23 = sshll.u32 %s606_s2, 4  ;;  %s5055_s5 = scalar_lea.hbm %s5777_s11, %s4973_s0  ;;  %s614_s23 = int_to_ptr.vmem [resolvable:$true] %s613_s23 }
  0x71   : > { %4266 = dma.hbm_to_vmem [thread:$0]  (!%p5828_p9), %s4993_s21, 16, %s589_s3, %s4995_s25  }
  0x72   : > { %s4528_s8 = scalar_lea.hbm %s5030_s17, 16  ;;  %s4533_s14 = scalar_lea.hbm %s5775_s9, 32 }
  0x73   : > { %p4529_p8 = scmp.ne.s32.totalorder %s5030_s17, %s4528_s8  ;;  %p4534_p13 = scmp.lt.u32.totalorder %s5030_s17, %s5775_s9 }
  0x74   : > { %p4535_p3 = scmp.lt.u32.totalorder %s4533_s14, %s4528_s8  ;;  %p4537_p1 = scmp.lt.u32.totalorder %s4528_s8, %s5030_s17 }
  0x75   : > { %p4531_p2 = pnand %p4529_p8, %p5001_p12 }
  0x76   : > { %p4536_p6 = por %p4535_p3, %p4534_p13 }
  0x77   : > { %p4532_p10 = pneg %p4531_p2 }
  0x78   : > { %p4538_p4 = por %p4537_p1, %p4536_p6 }
  0x7a   : > { %p4539_p5 = pnand %p4538_p4, %p4532_p10 }
  0x7c   : > { %4542 = shalt.err (!%p4539_p5)
}
  0x7d   : > { %s4543_s21 = scalar_lea.vmem %s614_s23, 16  ;;  %s4771_s3 = smov [#allocation10]  }
  0x7e   : > { %p4544_p11 = scmp.ne.s32.totalorder %s614_s23, %s4543_s21  ;;  %s4548_s2 = sshll.u32 %s4771_s3, 4  ;;  %s4549_s2 = int_to_ptr.vmem [resolvable:$false] %s4548_s2 }
  0x7f   : > { %s4550_s26 = scalar_lea.vmem %s4549_s2, 32  ;;  %p4551_p8 = scmp.lt.s32.totalorder %s614_s23, %s4549_s2 }
  0x80   : > { %p4546_p0 = pnand %p4544_p11, %p5001_p12  ;;  %p4552_p2 = scmp.lt.s32.totalorder %s4550_s26, %s4543_s21 }
  0x82   : > { %p4547_p7 = pneg %p4546_p0  ;;  %p4553_p9 = por %p4552_p2, %p4551_p8 }
  0x84   : > { %p4554_p3 = pnand %p4553_p9, %p4547_p7 }
  0x86   : > { %4557 = shalt.err (!%p4554_p3)
}
  0x87   : > { %p5829_p13 = scmp.ne.s32.totalorder %s5820_s19, 0  ;;  %s631_s20 = scalar_lea.vmem [#allocation11], %s4966_s28 }
  0x88   : > { %s638_s8 = sshll.u32 %s631_s20, 4  ;;  %s5080_s14 = scalar_lea.hbm %s5778_s12, %s4973_s0  ;;  %s639_s8 = int_to_ptr.vmem [resolvable:$true] %s638_s8 }
  0x89   : > { %4269 = dma.hbm_to_vmem [thread:$0]  (!%p5829_p13), %s5030_s17, 16, %s614_s23, %s4995_s25  }
  0x8a   : > { %s4558_s15 = scalar_lea.hbm %s5055_s5, 16  ;;  %s4563_s3 = scalar_lea.hbm %s5777_s11, 32 }
  0x8b   : > { %p4559_p9 = scmp.ne.s32.totalorder %s5055_s5, %s4558_s15  ;;  %p4564_p1 = scmp.lt.u32.totalorder %s5055_s5, %s5777_s11 }
  0x8c   : > { %p4565_p4 = scmp.lt.u32.totalorder %s4563_s3, %s4558_s15  ;;  %p4567_p11 = scmp.lt.u32.totalorder %s4558_s15, %s5055_s5 }
  0x8d   : > { %p4561_p10 = pnand %p4559_p9, %p5001_p12 }
  0x8e   : > { %p4566_p5 = por %p4565_p4, %p4564_p1 }
  0x8f   : > { %p4562_p6 = pneg %p4561_p10 }
  0x90   : > { %p4568_p0 = por %p4567_p11, %p4566_p5 }
  0x92   : > { %p4569_p7 = pnand %p4568_p0, %p4562_p6 }
  0x94   : > { %4572 = shalt.err (!%p4569_p7)
}
  0x95   : > { %s4573_s17 = scalar_lea.vmem %s639_s8, 16  ;;  %s4772_s23 = smov [#allocation11]  }
  0x96   : > { %p4574_p8 = scmp.ne.s32.totalorder %s639_s8, %s4573_s17  ;;  %s4578_s20 = sshll.u32 %s4772_s23, 4  ;;  %s4579_s20 = int_to_ptr.vmem [resolvable:$false] %s4578_s20 }
  0x97   : > { %s4580_s16 = scalar_lea.vmem %s4579_s20, 32  ;;  %p4581_p9 = scmp.lt.s32.totalorder %s639_s8, %s4579_s20 }
  0x98   : > { %p4576_p2 = pnand %p4574_p8, %p5001_p12  ;;  %p4582_p10 = scmp.lt.s32.totalorder %s4580_s16, %s4573_s17 }
  0x9a   : > { %p4577_p3 = pneg %p4576_p2  ;;  %p4583_p13 = por %p4582_p10, %p4581_p9 }
  0x9c   : > { %p4584_p1 = pnand %p4583_p13, %p4577_p3 }
  0x9e   : > { %4587 = shalt.err (!%p4584_p1)
}
  0x9f   : > { %p5830_p4 = scmp.ne.s32.totalorder %s5820_s19, 0  ;;  %s648_s10 = scalar_lea.vmem [#allocation12], %s4966_s28 }
  0xa0   : > { %s655_s15 = sshll.u32 %s648_s10, 4  ;;  %s4773_s6 = smov [#allocation6]   ;;  %s5101_s15 = int_to_ptr.vmem [resolvable:$true] %s655_s15 }
  0xa1   : > { %4272 = dma.hbm_to_vmem [thread:$0]  (!%p5830_p4), %s5055_s5, 16, %s639_s8, %s4995_s25  }
  0xa2   : > { %s509_s21 = sshll.u32 %s4773_s6, 4  ;;  %s4588_s3 = scalar_lea.hbm %s5080_s14, 16  ;;  %s510_s21 = int_to_ptr.vmem [resolvable:$true] %s509_s21 }
  0xa3   : > { %p4589_p13 = scmp.ne.s32.totalorder %s5080_s14, %s4588_s3  ;;  %s4593_s17 = scalar_lea.hbm %s5778_s12, 32 }
  0xa4   : > { %p4594_p11 = scmp.lt.u32.totalorder %s5080_s14, %s5778_s12  ;;  %p4595_p0 = scmp.lt.u32.totalorder %s4593_s17, %s4588_s3 }
  0xa5   : > { %p4591_p6 = pnand %p4589_p13, %p5001_p12  ;;  %p4597_p8 = scmp.lt.u32.totalorder %s4588_s3, %s5080_s14 }
  0xa6   : > { %p4596_p7 = por %p4595_p0, %p4594_p11 }
  0xa7   : > { %p4592_p5 = pneg %p4591_p6 }
  0xa8   : > { %p4598_p2 = por %p4597_p8, %p4596_p7 }
  0xaa   : > { %p4599_p3 = pnand %p4598_p2, %p4592_p5 }
  0xac   : > { %4602 = shalt.err (!%p4599_p3)
}
  0xad   : > { %s4603_s5 = scalar_lea.vmem %s5101_s15, 16  ;;  %s4774_s8 = smov [#allocation12]  }
  0xae   : > { %p4604_p9 = scmp.ne.s32.totalorder %s5101_s15, %s4603_s5  ;;  %s4608_s16 = sshll.u32 %s4774_s8, 4  ;;  %s4609_s16 = int_to_ptr.vmem [resolvable:$false] %s4608_s16 }
  0xaf   : > { %s4610_s10 = scalar_lea.vmem %s4609_s16, 32  ;;  %p4611_p13 = scmp.lt.s32.totalorder %s5101_s15, %s4609_s16 }
  0xb0   : > { %p4606_p10 = pnand %p4604_p9, %p5001_p12  ;;  %p4612_p6 = scmp.lt.s32.totalorder %s4610_s10, %s4603_s5 }
  0xb2   : > { %p4607_p1 = pneg %p4606_p10  ;;  %p4613_p11 = por %p4612_p6, %p4611_p13 }
  0xb4   : > { %p4614_p0 = pnand %p4613_p11, %p4607_p1 }
  0xb6   : > { %4617 = shalt.err (!%p4614_p0)
}
  0xb7   : > { %4275 = dma.hbm_to_vmem [thread:$0]  (!%p5830_p4), %s5080_s14, 16, %s5101_s15, %s4995_s25  }
  0xb8   : > { %s5831_s1 = sld [smem:[#allocation25_spill]]  ;;  %p5832_p7 = scmp.ne.s32.totalorder %s5819_s18, 0 }
  0xba   : > { %p5833_p8 = pneg %p5832_p7 }
  0xbe   : > { %s4618_s2 = scalar_lea.hbm %s5831_s1, 32 }
  0xbf   : > { %p4619_p5 = scmp.ne.s32.totalorder %s5831_s1, %s4618_s2  ;;  %p4625_p9 = scmp.lt.u32.totalorder %s4618_s2, %s5831_s1 }
  0xc1   : > { %p4621_p2 = pnand %p4619_p5, %p5833_p8 }
  0xc3   : > { %p4622_p3 = pneg %p4621_p2 }
  0xc5   : > { %p4627_p10 = pnand %p4625_p9, %p4622_p3 }
  0xc7   : > { %4630 = shalt.err (!%p4627_p10)
}
  0xc8   : > { %s4631_s14 = scalar_lea.vmem %s510_s21, 32  ;;  %p5834_p13 = pmov %p5833_p8 }
  0xc9   : > { %p4632_p1 = scmp.ne.s32.totalorder %s510_s21, %s4631_s14  ;;  %p4639_p0 = scmp.lt.s32.totalorder %s510_s21, %s510_s21 }
  0xca   : > { %p4640_p4 = scmp.lt.s32.totalorder %s4631_s14, %s4631_s14 }
  0xcb   : > { %p4634_p6 = pnand %p4632_p1, %p5834_p13 }
  0xcc   : > { %p4641_p12 = por %p4640_p4, %p4639_p0 }
  0xcd   : > { %p4635_p11 = pneg %p4634_p6 }
  0xcf   : > { %p4642_p5 = pnand %p4641_p12, %p4635_p11 }
  0xd1   : > { %4645 = shalt.err (!%p4642_p5)
}
  0xd2   : > { %s4775_s15 = smov 16   ;;  %s4776_s5 = smov 1  }
  0xd3   : > { %4259 = dma.hbm_to_vmem [thread:$0]  (!%p5832_p7), %s5831_s1, 32, %s510_s21, [#allocation7], %s4775_s15, %s4775_s15, %s4776_s5  }
  0xd4   : > { %s5149_s3 = scalar_lea.hbm %s5779_s13, %s4973_s0  ;;  %s665_s2 = scalar_lea.vmem [#allocation13], %s4966_s28 }
  0xd5   : > { %s672_s26 = sshll.u32 %s665_s2, 4  ;;  %s4646_s17 = scalar_lea.hbm %s5149_s3, 16  ;;  %s673_s26 = int_to_ptr.vmem [resolvable:$true] %s672_s26 }
  0xd6   : > { %p4647_p12 = scmp.ne.s32.totalorder %s5149_s3, %s4646_s17  ;;  %p5835_p4 = scmp.ne.s32.totalorder %s5827_s4, 0 }
  0xd7   : > { %s4651_s21 = scalar_lea.hbm %s5779_s13, 32  ;;  %p4652_p7 = scmp.lt.u32.totalorder %s5149_s3, %s5779_s13 }
  0xd8   : > { %p4649_p8 = pnand %p4647_p12, %p5835_p4  ;;  %p4653_p3 = scmp.lt.u32.totalorder %s4651_s21, %s4646_s17 }
  0xd9   : > { %p4655_p10 = scmp.lt.u32.totalorder %s4646_s17, %s5149_s3 }
  0xda   : > { %p4650_p2 = pneg %p4649_p8  ;;  %p4654_p9 = por %p4653_p3, %p4652_p7 }
  0xdc   : > { %p4656_p1 = por %p4655_p10, %p4654_p9 }
  0xde   : > { %p4657_p13 = pnand %p4656_p1, %p4650_p2 }
  0xe0   : > { %4660 = shalt.err (!%p4657_p13)
}
  0xe1   : > { %s4661_s28 = scalar_lea.vmem %s673_s26, 16  ;;  %s4777_s0 = smov [#allocation13]  }
  0xe2   : > { %p4662_p6 = scmp.ne.s32.totalorder %s673_s26, %s4661_s28  ;;  %s4666_s15 = sshll.u32 %s4777_s0, 4  ;;  %s4667_s15 = int_to_ptr.vmem [resolvable:$false] %s4666_s15 }
  0xe3   : > { %s4668_s5 = scalar_lea.vmem %s4667_s15, 32  ;;  %p4669_p5 = scmp.lt.s32.totalorder %s673_s26, %s4667_s15 }
  0xe4   : > { %p4664_p11 = pnand %p4662_p6, %p5835_p4  ;;  %p4670_p12 = scmp.lt.s32.totalorder %s4668_s5, %s4661_s28 }
  0xe6   : > { %p4665_p0 = pneg %p4664_p11  ;;  %p4671_p8 = por %p4670_p12, %p4669_p5 }
  0xe8   : > { %p4672_p3 = pnand %p4671_p8, %p4665_p0 }
  0xea   : > { %4675 = shalt.err (!%p4672_p3)
}
  0xeb   : > { %p5836_p7 = scmp.ne.s32.totalorder %s5820_s19, 0  ;;  %p5837_p2 = scmp.ne.s32.totalorder %s5818_s30, 0 }
  0xec   : > { %p5838_p4 = scmp.eq.s32.totalorder (!%p5837_p2), %s4908_s27, 0 }
  0xed   : > { %4278 = dma.hbm_to_vmem [thread:$0]  (!%p5836_p7), %s5149_s3, 16, %s673_s26, %s4995_s25  }
  0xee   : > { %681 = sbr.rel (%p5837_p2) target bundleno = 3303 (0xce7), region = 84 }
  0xf5   : > { %4727 = dma.done.wait (%p5838_p4), [#allocation4], 256   ;;  %p5839_p9 = pmov %p5838_p4 }
  0xf6   : > { %p5840_p10 = pmov %p5838_p4 }
  0xf7   : > { %4729 = vsyncadd (%p5839_p9), [#allocation4], 4294967040 }
  0xf8   : > { %4731 = dma.done.wait (%p5840_p10), [#allocation7], 32   ;;  %p5841_p1 = pmov %p5838_p4 }
  0xf9   : > { %s691_s19 = sand.u32 1, %s4908_s27   ;;  %s5182_s25 = sand.u32 1, %s4748_s22  }
  0xfa   : > { %4733 = vsyncadd (%p5841_p1), [#allocation7], 4294967264  ;;  %s692_s30 = scalar_lea.sflag [#allocation4], %s691_s19  ;;  %p5842_p13 = scmp.ne.s32.totalorder %s5817_s29, 0 }
  0xfc   : > { %4735 = dma.done.wait (%p5842_p13), %s692_s30, 96  }
  0xfd   : > { %4737 = vsyncadd (%p5842_p13), %s692_s30, 4294967200  ;;  %p829_p6 = scmp.lt.s32.totalorder %s4756_s24, 1  ;;  %s5843_s2 = sld [smem:[#allocation26_spill]] }
  0xfe   : > { %s5844_s29 = sld [smem:[#allocation27_spill]]  ;;  %s5845_s14 = sld [smem:[#allocation28_spill]] }
  0xff   : > { %s830_s8 = scalar_select %p829_p6, %s4756_s24, 1 }
 0x100   : > { %s5846_s5 = sld [smem:[#allocation29_spill]]  ;;  %s5847_s6 = sld [smem:[#allocation31_spill]] }
 0x101   : > { %s4000_s16 = sshll.u32 %s830_s8, 4  ;;  %s4005_s10 = sshll.u32 %s830_s8, 6 }
 0x102   : > { %s5848_s17 = sld [smem:[#allocation32_spill]]  ;;  %s710_s1 = scalar_lea.vmem [#allocation10], %s5182_s25 }
 0x103   : > { %s5194_s26 = scalar_lea.vmem %s5843_s2, %s4000_s16  ;;  %s718_s21 = scalar_lea.vmem [#allocation11], %s5182_s25 }
 0x104   : > { %s5199_s23 = scalar_lea.vmem %s5844_s29, %s4000_s16  ;;  %s5204_s28 = scalar_lea.vmem %s5845_s14, %s4000_s16 }
 0x105   : > { %s702_s29 = scalar_lea.vmem [#allocation9], %s5182_s25  ;;  %s726_s20 = scalar_lea.vmem [#allocation12], %s5182_s25 }
 0x106   : > { %s5209_s19 = scalar_lea.vmem %s5846_s5, %s4000_s16  ;;  %s5214_s3 = scalar_lea.vmem %s5847_s6, %s4000_s16 }
 0x107   : > { %s734_s14 = scalar_lea.vmem [#allocation13], %s5182_s25  ;;  %p3929_p11 = scmp.ne.s32.totalorder %s4756_s24, 0 }
 0x108   : > { %s5219_s18 = scalar_lea.vmem %s5848_s17, %s4005_s10  ;;  %v864_v0 = vld [vmem:[#allocation3] sm:$0xff] (!%p3929_p11)  ;;  %vm866_vm0 = vcmask (!%p3929_p11), 261120   ;;  %v865_v1 = vld [vmem:[#allocation3 + $0x8] sm:$0xff] (!%p3929_p11) }
 0x109   : > { %863 = sbr.rel (%p3929_p11) target bundleno = 272 (0x110), region = 120  ;;  %867 = vst.msk [vmem:[#allocation2] sm:$0xff] (!%p3929_p11), %vm866_vm0, %v864_v0  ;;  %868 = vst.msk [vmem:[#allocation2 + $0x8] sm:$0xff] (!%p3929_p11), %vm866_vm0, %v865_v1 }
 0x110 PF: > { %v869_v2 = vld [vmem:[#allocation2] sm:$0xff]  ;;  %vm879_vm1 = vcmask 261120   ;;  %v870_v3 = vld [vmem:[#allocation2 + $0x8] sm:$0xff]  ;;  %v4778_v17 = vmov 0.0   ;;  %vm4779_vm2 = vmmov 0   ;;  %s5849_s4 = scalar_lea.vmem [#allocation8], %s5182_s25  ;;  %v1123_v54 = vlaneseq }
 0x111   : > { %v880_v4 = vsel %vm879_vm1, %v869_v2, 0.0  ;;  %v883_v5 = vsel %vm879_vm1, %v870_v3, 0.0  ;;  %v4371_v16 = vld [vmem:[%s5194_s26] sm:$0xff]   ;;  %4065 = vmatprep.subr.bf16.mxu0 %v4778_v17  ;;  %4089 = vmatprep.subr.bf16.mxu1 %v4778_v17  ;;  %v4372_v18 = vld [vmem:[%s5194_s26 + $0x8] sm:$0xff]   ;;  %s4780_s16 = smov 120   ;;  %s4781_s10 = smov 112  }
 0x112   : > { %881 = vadd.xlane.f32.xlu0 %v880_v4  ;;  %4066 = vmatpush3.bf16.msra.mxu0 %v4371_v16  ;;  %v3930_v27 = vld [vmem:[%s5849_s4] ss:$0 sm:$0xff]  ;;  %v4374_v37 = vld [vmem:[%s5199_s23 + $0x8] sm:$0xff]   ;;  %s4782_s26 = smov 104   ;;  %v4783_v52 = vmov 1983009808  }
 0x113   : > { %4069 = vmatprep.mubr.msk.bf16.mxu0 %vm4779_vm2, %v4778_v17  ;;  %4067 = vmatprep.subr.bf16.mxu0 %v4778_v17  ;;  %v3931_v31 = vld [vmem:[%s702_s29] ss:$0 sm:$0xff]  ;;  %v4376_v39 = vld [vmem:[%s5204_s28 + $0x8] sm:$0xff]   ;;  %v1121_v53 = vunpack.c.l.s4 %v4783_v52  ;;  %v4784_v57 = vmov 1934713408   ;;  %v5290_v60 = vshrl.u32 %v1123_v54, 7 }
 0x114   : > { %4091 = vmatprep.mubr.msk.bf16.mxu1 %vm4779_vm2, %v4778_v17  ;;  %v4373_v35 = vld [vmem:[%s5199_s23] sm:$0xff]   ;;  %v1153_v58 = vunpack.c.l.s4 %v4784_v57  ;;  %vm1998_vm3 = vcmask 64512   ;;  %vm2494_vm6 = vcmask 1043456   ;;  %s4785_s23 = smov 16   ;;  %s4787_s0 = smov 24   ;;  %vm3158_vm7 = vcmask 130048  }
 0x115   : > { %v4375_v38 = vld [vmem:[%s5204_s28] sm:$0xff]   ;;  %v1122_v59 = vunpack.c.0.s8 %v1121_v53  ;;  %s4786_s28 = smov 8   ;;  %vm3161_vm8 = vcmask 195584   ;;  %p3991_p0 = scmp.ne.s32.totalorder %s4756_s24, 1 }
 0x116   : > { %884 = vadd.xlane.f32.xlu0 %v883_v5  ;;  %4068 = vmatpush3.bf16.msra.mxu0 %v4372_v18  ;;  %v1154_v63 = vunpack.c.0.s8 %v1153_v58  ;;  %s5850_s15 = sld [smem:[#allocation33_spill]] (!%p3991_p0)  ;;  %vm4791_vm11 = vmmov (!%p3991_p0), 0   ;;  %s5851_s8 = sld [smem:[#allocation34_spill]] (!%p3991_p0) }
 0x117   : > { %4073 = vmatprep.subr.bf16.mxu0 %v4778_v17  ;;  %v5293_v0 = vsub.s32 %v1122_v59, %v5290_v60 }
 0x19f   : > { %v882_v6 = vpop.xlane.xlu0 %881 }
 0x1a0   : > { %v887_v7 = vmul.f32 0.03125, %v882_v6 }
 0x1a2   : > { %v889_v8 = vsub.f32 %v869_v2, %v887_v7  ;;  %v5296_v7 = vsub.s32 %v1154_v63, %v5290_v60 }
 0x1a3   : > { %v885_v9 = vpop.xlane.xlu0 %884 }
 0x1a4   : > { %v888_v10 = vmul.f32 0.03125, %v885_v9  ;;  %v891_v11 = vmul.f32 %v889_v8, %v889_v8 }
 0x1a6   : > { %v890_v12 = vsub.f32 %v870_v3, %v888_v10  ;;  %v893_v13 = vsel %vm879_vm1, %v891_v11, 0.0 }
 0x1a7   : > { %894 = vadd.xlane.f32.xlu1 %v893_v13 }
 0x1a8   : > { %v892_v14 = vmul.f32 %v890_v12, %v890_v12 }
 0x1aa   : > { %v896_v15 = vsel %vm879_vm1, %v892_v14, 0.0 }
 0x1ab   : > { %897 = vadd.xlane.f32.xlu1 %v896_v15 }
 0x234   : > { %v895_v19 = vpop.xlane.xlu1 %894 }
 0x235   : > { %v899_v20 = vmul.f32 0.03125, %v895_v19 }
 0x237   : > { %v901_v21 = vadd.f32 1e-05, %v899_v20 }
 0x238   : > { %v898_v22 = vpop.xlane.xlu1 %897 }
 0x239   : > { %4389 = vrsqrt.f32 %v901_v21  ;;  %v900_v23 = vmul.f32 0.03125, %v898_v22 }
 0x23b   : > { %v902_v24 = vadd.f32 1e-05, %v900_v23 }
 0x23d   : > { %4391 = vrsqrt.f32 %v902_v24 }
 0x243   : > { %v4390_v25 = vpop.eup %4389 }
 0x244   : > { %v905_v26 = vmul.f32 %v4390_v25, %v889_v8 }
 0x246   : > { %v913_v30 = vmul.f32 %v3930_v27, %v905_v26 }
 0x247   : > { %v4392_v28 = vpop.eup %4391 }
 0x248   : > { %v906_v29 = vmul.f32 %v4392_v28, %v890_v12  ;;  %v921_v33 = vadd.f32 %v3931_v31, %v913_v30 }
 0x24a   : > { %v914_v32 = vmul.f32 %v3930_v27, %v906_v29 }
 0x24c   : > { %v922_v34 = vadd.f32 %v3931_v31, %v914_v32 }
 0x24e   : > { %v923_v36 = vpack.c.bf16 %v922_v34, %v921_v33 }
 0x250   : > { %4070 = vmatmul.mubr.msk.bf16.vlgmr.msra.gmra.mrb[0].mxu0 %vm879_vm1, %v923_v36 }
 0x251   : > { %4074 = vmatpush3.bf16.msra.mxu0 %v4373_v35  ;;  %4077 = vmatprep.mubr.msk.bf16.mxu0 %vm4779_vm2, %v4778_v17 }
 0x252   : > { %4075 = vmatprep.subr.bf16.mxu0 %v4778_v17 }
 0x255   : > { %4076 = vmatpush3.bf16.msra.mxu0 %v4374_v37 }
 0x256   : > { %4081 = vmatprep.subr.bf16.mxu0 %v4778_v17 }
 0x258   : > { %4078 = vmatmul.mubr.msk.bf16.vlgmr.msra.gmra.mrb[4].mxu0 %vm879_vm1, %v923_v36 }
 0x259   : > { %4082 = vmatpush3.bf16.msra.mxu0 %v4375_v38  ;;  %4085 = vmatprep.mubr.msk.bf16.mxu0 %vm4779_vm2, %v4778_v17 }
 0x25a   : > { %4083 = vmatprep.subr.bf16.mxu0 %v4778_v17 }
 0x25d   : > { %4084 = vmatpush3.bf16.msra.mxu0 %v4376_v39 }
 0x25e   : > { %4095 = vmatprep.subr.bf16.mxu0 %v4778_v17 }
 0x260   : > { %4086 = vmatmul.mubr.msk.bf16.vlgmr.msra.gmra.mrb[8].mxu0 %vm879_vm1, %v923_v36 }
 0x261   : > { %4097 = vmatprep.mubr.msk.bf16.mxu0 %vm4779_vm2, %v4778_v17 }
 0x323   : > { %v5262_v40 = vpop.f32.mrb[0].mxu0 }
 0x324   : > { %1100 = vrot.lane.b32.xlu0 %v5262_v40, %s4780_s16  ;;  %v4071_v41 = vpop.f32.mrb[1].mxu0 }
 0x325   : > { %v5266_v42 = vpop.f32.mrb[2].mxu0 }
 0x326   : > { %1102 = vrot.lane.b32.xlu1 %v5266_v42, %s4780_s16  ;;  %v4072_v43 = vpop.f32.mrb[3].mxu0 }
 0x32b   : > { %v1034_v44 = vpop.f32.mrb[4].mxu0 }
 0x32c   : > { %1406 = vrot.lane.b32.xlu1 %v1034_v44, %s4781_s10  ;;  %1400 = vrot.lane.b32.xlu0 %v1034_v44, %s4780_s16  ;;  %v4079_v45 = vpop.f32.mrb[5].mxu0 }
 0x32d   : > { %v1037_v46 = vpop.f32.mrb[6].mxu0 }
 0x32e   : > { %v4080_v47 = vpop.f32.mrb[7].mxu0 }
 0x330   : > { %1412 = vrot.lane.b32.xlu0 %v1034_v44, %s4782_s26  ;;  %1402 = vrot.lane.b32.xlu1 %v1037_v46, %s4780_s16 }
 0x333   : > { %v5274_v48 = vpop.f32.mrb[8].mxu0 }
 0x334   : > { %1106 = vrot.lane.b32.xlu0 %v5262_v40, %s4781_s10  ;;  %1408 = vrot.lane.b32.xlu1 %v1037_v46, %s4781_s10  ;;  %v4087_v49 = vpop.f32.mrb[9].mxu0 }
 0x335   : > { %v5279_v50 = vpop.f32.mrb[10].mxu0 }
 0x336   : > { %v4088_v51 = vpop.f32.mrb[11].mxu0 }
 0x338   : > { %1112 = vrot.lane.b32.xlu0 %v5262_v40, %s4782_s26  ;;  %1414 = vrot.lane.b32.xlu1 %v1037_v46, %s4782_s26 }
 0x33c   : > { %1108 = vrot.lane.b32.xlu1 %v5266_v42, %s4781_s10 }
 0x340   : > { %1114 = vrot.lane.b32.xlu1 %v5266_v42, %s4782_s26 }
 0x396   : > { %v1101_v55 = vpop.permute.xlu0 %1100 }
 0x398   : > { %v5288_v56 = vpop.permute.xlu1 %1102 }
 0x39e   : > { %v1407_v61 = vpop.permute.xlu1 %1406  ;;  %v1401_v62 = vpop.permute.xlu0 %1400 }
 0x39f   : > { %v1418_v1 = vcombine.low %v1034_v44, %v1407_v61  ;;  %v1419_v2 = vcombine.high %v1034_v44, %v1407_v61 }
 0x3a1   : > { %v1426_v8 = vrot.slane %v1418_v1, %v5293_v0  ;;  %v1433_v9 = vrot.slane %v1419_v2, %v5293_v0 }
 0x3a2   : > { %v1413_v3 = vpop.permute.xlu0 %1412  ;;  %v1403_v4 = vpop.permute.xlu1 %1402 }
 0x3a3   : > { %v1434_v5 = vcombine.low %v1401_v62, %v1413_v3  ;;  %v1435_v6 = vcombine.high %v1401_v62, %v1413_v3 }
 0x3a5   : > { %v1442_v10 = vrot.slane %v1434_v5, %v5293_v0  ;;  %v1449_v11 = vrot.slane %v1435_v6, %v5293_v0 }
 0x3a6   : > { %v1107_v12 = vpop.permute.xlu0 %1106  ;;  %v1409_v13 = vpop.permute.xlu1 %1408 }
 0x3a7   : > { %v1450_v14 = vcombine.low %v1426_v8, %v1442_v10  ;;  %v1451_v15 = vcombine.high %v1426_v8, %v1442_v10  ;;  %v1466_v16 = vcombine.low %v1433_v9, %v1449_v11  ;;  %v1467_v18 = vcombine.high %v1433_v9, %v1449_v11 }
 0x3a8   : > { %v1118_v19 = vcombine.low %v5262_v40, %v1107_v12  ;;  %v1119_v20 = vcombine.high %v5262_v40, %v1107_v12  ;;  %v1486_v21 = vcombine.low %v1037_v46, %v1409_v13  ;;  %v1487_v22 = vcombine.high %v1037_v46, %v1409_v13 }
 0x3a9   : > { %v1458_v23 = vrot.slane %v1450_v14, %v5296_v7  ;;  %v1465_v24 = vrot.slane %v1451_v15, %v5296_v7  ;;  %v1474_v25 = vrot.slane %v1466_v16, %v5296_v7  ;;  %v1481_v26 = vrot.slane %v1467_v18, %v5296_v7 }
 0x3aa   : > { %v1126_v27 = vrot.slane %v1118_v19, %v5293_v0  ;;  %v1133_v28 = vrot.slane %v1119_v20, %v5293_v0  ;;  %v1494_v29 = vrot.slane %v1486_v21, %v5293_v0  ;;  %v1501_v30 = vrot.slane %v1487_v22, %v5293_v0  ;;  %v1113_v31 = vpop.permute.xlu0 %1112  ;;  %v1415_v32 = vpop.permute.xlu1 %1414 }
 0x3ab   : > { %v1554_v33 = vcombine.low %v1458_v23, %v1465_v24  ;;  %v3945_v34 = vcombine.high %v1458_v23, %v1465_v24  ;;  %v1570_v35 = vcombine.low %v1474_v25, %v1481_v26  ;;  %v3946_v36 = vcombine.high %v1474_v25, %v1481_v26 }
 0x3ac   : > { %v1134_v37 = vcombine.low %v1101_v55, %v1113_v31  ;;  %v1135_v38 = vcombine.high %v1101_v55, %v1113_v31  ;;  %v1502_v39 = vcombine.low %v1403_v4, %v1415_v32  ;;  %v1503_v40 = vcombine.high %v1403_v4, %v1415_v32 }
 0x3ad   : > { %v5313_v41 = vrot.slane %v1554_v33, %v5293_v0  ;;  %v5316_v43 = vrot.slane %v3945_v34, %v5293_v0  ;;  %v5319_v44 = vrot.slane %v1570_v35, %v5293_v0  ;;  %v5322_v45 = vrot.slane %v3946_v36, %v5293_v0 }
 0x3ae   : > { %v1142_v46 = vrot.slane %v1134_v37, %v5293_v0  ;;  %v1149_v47 = vrot.slane %v1135_v38, %v5293_v0  ;;  %v1510_v49 = vrot.slane %v1502_v39, %v5293_v0  ;;  %v1517_v51 = vrot.slane %v1503_v40, %v5293_v0  ;;  %v1109_v52 = vpop.permute.xlu1 %1108 }
 0x3af   : > { %v1186_v53 = vcombine.low %v5266_v42, %v1109_v52  ;;  %v1187_v54 = vcombine.high %v5266_v42, %v1109_v52  ;;  %v1586_v55 = vcombine.low %v5313_v41, %v5316_v43  ;;  %v1602_v57 = vcombine.low %v5319_v44, %v5322_v45 }
 0x3b0   : > { %v1150_v58 = vcombine.low %v1126_v27, %v1142_v46  ;;  %v1151_v59 = vcombine.high %v1126_v27, %v1142_v46  ;;  %v1166_v61 = vcombine.low %v1133_v28, %v1149_v47  ;;  %v1167_v62 = vcombine.high %v1133_v28, %v1149_v47 }
 0x3b1   : > { %v1518_v63 = vcombine.low %v1494_v29, %v1510_v49  ;;  %v1519_v1 = vcombine.high %v1494_v29, %v1510_v49  ;;  %v1534_v2 = vcombine.low %v1501_v30, %v1517_v51  ;;  %v1535_v3 = vcombine.high %v1501_v30, %v1517_v51 }
 0x3b2   : > { %v1158_v4 = vrot.slane %v1150_v58, %v5296_v7  ;;  %v1165_v5 = vrot.slane %v1151_v59, %v5296_v7  ;;  %v1174_v42 = vrot.slane %v1166_v61, %v5296_v7  ;;  %v1181_v6 = vrot.slane %v1167_v62, %v5296_v7  ;;  %v1115_v25 = vpop.permute.xlu1 %1114 }
 0x3b3   : > { %v1526_v8 = vrot.slane %v1518_v63, %v5296_v7  ;;  %v1533_v9 = vrot.slane %v1519_v1, %v5296_v7  ;;  %v1542_v10 = vrot.slane %v1534_v2, %v5296_v7  ;;  %v1549_v11 = vrot.slane %v1535_v3, %v5296_v7 }
 0x3b4   : > { %v1254_v12 = vcombine.low %v1158_v4, %v1165_v5  ;;  %v3941_v13 = vcombine.high %v1158_v4, %v1165_v5  ;;  %v1270_v14 = vcombine.low %v1174_v42, %v1181_v6  ;;  %v3942_v15 = vcombine.high %v1174_v42, %v1181_v6 }
 0x3b5   : > { %v1622_v16 = vcombine.low %v1526_v8, %v1533_v9  ;;  %v3947_v18 = vcombine.high %v1526_v8, %v1533_v9  ;;  %v1638_v19 = vcombine.low %v1542_v10, %v1549_v11  ;;  %v3948_v20 = vcombine.high %v1542_v10, %v1549_v11 }
 0x3b6   : > { %v5343_v21 = vrot.slane %v1254_v12, %v5293_v0  ;;  %v5346_v22 = vrot.slane %v3941_v13, %v5293_v0  ;;  %v5349_v23 = vrot.slane %v1270_v14, %v5293_v0  ;;  %v5352_v24 = vrot.slane %v3942_v15, %v5293_v0 }
 0x3b7   : > { %v5355_v26 = vrot.slane %v1622_v16, %v5293_v0  ;;  %v5358_v27 = vrot.slane %v3947_v18, %v5293_v0  ;;  %v5361_v28 = vrot.slane %v1638_v19, %v5293_v0  ;;  %v5364_v29 = vrot.slane %v3948_v20, %v5293_v0 }
 0x3b8   : > { %v1194_v30 = vrot.slane %v1186_v53, %v5293_v0  ;;  %v1202_v31 = vcombine.low %v5288_v56, %v1115_v25  ;;  %v1203_v32 = vcombine.high %v5288_v56, %v1115_v25  ;;  %v1594_v33 = vrot.slane %v1586_v55, %v5296_v7 }
 0x3b9   : > { %v1610_v34 = vrot.slane %v1602_v57, %v5296_v7  ;;  %v1286_v35 = vcombine.low %v5343_v21, %v5346_v22  ;;  %v1302_v36 = vcombine.low %v5349_v23, %v5352_v24  ;;  %v1654_v37 = vcombine.low %v5355_v26, %v5358_v27 }
 0x3ba   : > { %v1670_v38 = vcombine.low %v5361_v28, %v5364_v29  ;;  %v1201_v39 = vrot.slane %v1187_v54, %v5293_v0  ;;  %v1210_v56 = vrot.slane %v1202_v31, %v5293_v0  ;;  %v1217_v40 = vrot.slane %v1203_v32, %v5293_v0 }
 0x3bb   : > { %v1618_v46 = vcombine.low %v1594_v33, %v1610_v34  ;;  %v1294_v47 = vrot.slane %v1286_v35, %v5296_v7  ;;  %v1310_v49 = vrot.slane %v1302_v36, %v5296_v7  ;;  %v1662_v51 = vrot.slane %v1654_v37, %v5296_v7 }
 0x3bc   : > { %v1678_v52 = vrot.slane %v1670_v38, %v5296_v7  ;;  %v1218_v53 = vcombine.low %v1194_v30, %v1210_v56  ;;  %v1219_v55 = vcombine.high %v1194_v30, %v1210_v56  ;;  %v1234_v57 = vcombine.low %v1201_v39, %v1217_v40 }
 0x3bd   : > { %v1235_v58 = vcombine.high %v1201_v39, %v1217_v40  ;;  %v1690_v59 = vpack.c.bf16 %v1618_v46, %v1618_v46  ;;  %v1318_v3 = vcombine.low %v1294_v47, %v1310_v49  ;;  %v1619_v5 = vcombine.high %v1594_v33, %v1610_v34 }
 0x3be   : > { %v1686_v61 = vcombine.low %v1662_v51, %v1678_v52  ;;  %v1226_v54 = vrot.slane %v1218_v53, %v5296_v7  ;;  %v1233_v62 = vrot.slane %v1219_v55, %v5296_v7  ;;  %v1242_v63 = vrot.slane %v1234_v57, %v5296_v7 }
 0x3bf   : > { %v1249_v1 = vrot.slane %v1235_v58, %v5296_v7  ;;  %v2003_v2 = vsel %vm1998_vm3, %v1690_v59, 0  ;;  %v1390_v15 = vpack.c.bf16 %v1318_v3, %v1318_v3  ;;  %v1692_v16 = vpack.c.bf16 %v1619_v5, %v1619_v5 }
 0x3c0   : > { %v1691_v4 = vpack.c.bf16 %v1686_v61, %v1686_v61  ;;  %v1322_v42 = vcombine.low %v1226_v54, %v1233_v62  ;;  %v3943_v6 = vcombine.high %v1226_v54, %v1233_v62  ;;  %4090 = vmatpush3.bf16.xpose.msra.mxu1 %v2003_v2  ;;  %v1587_v18 = vcombine.high %v5313_v41, %v5316_v43 }
 0x3c1   : > { %v1338_v8 = vcombine.low %v1242_v63, %v1249_v1  ;;  %v3944_v9 = vcombine.high %v1242_v63, %v1249_v1  ;;  %4101 = vmatprep.subr.bf16.mxu1 %v4778_v17  ;;  %v1603_v19 = vcombine.high %v5319_v44, %v5322_v45  ;;  %v1687_v30 = vcombine.high %v1662_v51, %v1678_v52 }
 0x3c2   : > { %v2049_v10 = vsel %vm1998_vm3, %v1691_v4, 0  ;;  %v1329_v11 = vrot.slane %v1322_v42, %v5293_v0  ;;  %v1337_v12 = vrot.slane %v3943_v6, %v5293_v0  ;;  %v1601_v31 = vrot.slane %v1587_v18, %v5296_v7 }
 0x3c3   : > { %v1345_v13 = vrot.slane %v1338_v8, %v5293_v0  ;;  %v1353_v14 = vrot.slane %v3944_v9, %v5293_v0  ;;  %4096 = vmatpush3.bf16.xpose.msra.mxu0 %v2049_v10  ;;  %v1617_v32 = vrot.slane %v1603_v19, %v5296_v7  ;;  %v1655_v35 = vcombine.high %v5355_v26, %v5358_v27  ;;  %v5456_v9 = vld [vmem:[#allocation6] sm:$0x1] }
 0x3c4   : > { %4107 = vmatprep.subr.bf16.mxu0 %v4778_v17  ;;  %v1354_v20 = vcombine.low %v1329_v11, %v1337_v12  ;;  %v1671_v41 = vcombine.high %v5361_v28, %v5364_v29  ;;  %v2095_v43 = vsel %vm1998_vm3, %v1692_v16, 0  ;;  %v1693_v36 = vpack.c.bf16 %v1687_v30, %v1687_v30 }
 0x3c5   : > { %v1370_v25 = vcombine.low %v1345_v13, %v1353_v14  ;;  %v1620_v44 = vcombine.low %v1601_v31, %v1617_v32  ;;  %v1669_v37 = vrot.slane %v1655_v35, %v5296_v7  ;;  %v1287_v38 = vcombine.high %v5343_v21, %v5346_v22 }
 0x3c6   : > { %v1362_v33 = vrot.slane %v1354_v20, %v5296_v7  ;;  %v1303_v26 = vcombine.high %v5349_v23, %v5352_v24  ;;  %v1319_v27 = vcombine.high %v1294_v47, %v1310_v49  ;;  %v1685_v28 = vrot.slane %v1671_v41, %v5296_v7 }
 0x3c7   : > { %v1378_v34 = vrot.slane %v1370_v25, %v5296_v7  ;;  %4092 = vmatmul.mubr.msk.bf16.vlgmr.msra.gmra.mrb[0].mxu1 %vm1998_vm3, %v1390_v15  ;;  %v1694_v39 = vpack.c.bf16 %v1620_v44, %v1620_v44  ;;  %v2141_v56 = vsel %vm1998_vm3, %v1693_v36, 0  ;;  %v1301_v21 = vrot.slane %v1287_v38, %v5296_v7 }
 0x3c8   : > { %4102 = vmatpush3.bf16.xpose.msra.mxu1 %v2095_v43  ;;  %4103 = vmatprep.mubr.msk.bf16.mxu1 %vm4779_vm2, %v4778_v17  ;;  %v1688_v40 = vcombine.low %v1669_v37, %v1685_v28  ;;  %v1392_v46 = vpack.c.bf16 %v1319_v27, %v1319_v27  ;;  %v1317_v22 = vrot.slane %v1303_v26, %v5296_v7  ;;  %vm873_vm4 = vcmp.eq.f32.partialorder %v5456_v9, 0.0 }
 0x3c9   : > { %v1386_v45 = vcombine.low %v1362_v33, %v1378_v34  ;;  %4113 = vmatprep.subr.bf16.mxu1 %v4778_v17  ;;  %v1355_v23 = vcombine.high %v1329_v11, %v1337_v12  ;;  %v1371_v24 = vcombine.high %v1345_v13, %v1353_v14  ;;  %v1387_v47 = vcombine.high %v1362_v33, %v1378_v34  ;;  %v5462_v11 = vld [vmem:[#allocation6 + $0x1] sm:$0x1] }
 0x3ca   : > { %v2187_v49 = vsel %vm1998_vm3, %v1694_v39, 0  ;;  %v1621_v51 = vcombine.high %v1601_v31, %v1617_v32  ;;  %v1695_v52 = vpack.c.bf16 %v1688_v40, %v1688_v40  ;;  %v1320_v53 = vcombine.low %v1301_v21, %v1317_v22 }
 0x3cb   : > { %v1391_v29 = vpack.c.bf16 %v1386_v45, %v1386_v45  ;;  %v1393_v55 = vpack.c.bf16 %v1387_v47, %v1387_v47  ;;  %v1369_v57 = vrot.slane %v1355_v23, %v5296_v7  ;;  %v1385_v58 = vrot.slane %v1371_v24, %v5296_v7 }
 0x3cc   : > { %v1696_v59 = vpack.c.bf16 %v1621_v51, %v1621_v51  ;;  %v2233_v61 = vsel %vm1998_vm3, %v1695_v52, 0  ;;  %v1689_v54 = vcombine.high %v1669_v37, %v1685_v28  ;;  %v1394_v62 = vpack.c.bf16 %v1320_v53, %v1320_v53 }
 0x3cd   : > { %4098 = vmatmul.mubr.msk.bf16.vlgmr.msra.gmra.mrb[12].mxu0 %vm1998_vm3, %v1391_v29  ;;  %v1388_v63 = vcombine.low %v1369_v57, %v1385_v58  ;;  %v1321_v3 = vcombine.high %v1301_v21, %v1317_v22  ;;  %v1389_v6 = vcombine.high %v1369_v57, %v1385_v58  ;;  %v5460_v10 = vsub.s32 0, %v5290_v60 }
 0x3ce   : > { %4108 = vmatpush3.bf16.xpose.msra.mxu0 %v2141_v56  ;;  %4109 = vmatprep.mubr.msk.bf16.mxu0 %vm4779_vm2, %v4778_v17  ;;  %v2279_v1 = vsel %vm1998_vm3, %v1696_v59, 0  ;;  %v1697_v2 = vpack.c.bf16 %v1689_v54, %v1689_v54  ;;  %v875_v12 = vsel %vm873_vm4, -1e+09, %v4778_v17  ;;  %vm874_vm5 = vcmp.eq.f32.partialorder %v5462_v11, 0.0 }
 0x3cf   : > { %4119 = vmatprep.subr.bf16.mxu0 %v4778_v17  ;;  %4104 = vmatmul.mubr.msk.bf16.vlgmr.msra.gmra.mrb[4].mxu1 %vm1998_vm3, %v1392_v46  ;;  %v1395_v4 = vpack.c.bf16 %v1388_v63, %v1388_v63  ;;  %v1396_v42 = vpack.c.bf16 %v1321_v3, %v1321_v3  ;;  %v1397_v8 = vpack.c.bf16 %v1389_v6, %v1389_v6  ;;  %v876_v18 = vsel %vm874_vm5, -1e+09, %v4778_v17 }
 0x3d0   : > { %4114 = vmatpush3.bf16.xpose.msra.mxu1 %v2187_v49  ;;  %4115 = vmatprep.mubr.msk.bf16.mxu1 %vm4779_vm2, %v4778_v17  ;;  %v2325_v5 = vsel %vm1998_vm3, %v1697_v2, 0  ;;  %v2380_v13 = vrot.slane %v875_v12, %v5460_v10  ;;  %v2384_v30 = vrot.slane %v876_v18, %v5460_v10  ;;  %vm3472_vm9 = vcmp.gt.f32.partialorder (!%p3991_p0), %v5456_v9, 0.0  ;;  %v4439_v9 = vld [vmem:[%s5850_s15 + $0x8] sm:$0xff] (!%p3991_p0)  }
 0x3d1   : > { %4125 = vmatprep.subr.bf16.mxu1 %v4778_v17  ;;  %vm3473_vm10 = vcmp.gt.f32.partialorder (!%p3991_p0), %v5462_v11, 0.0  ;;  %v4792_v11 = vmov (!%p3991_p0), 1966171168  }
 0x3d5   : > { %4110 = vmatmul.mubr.msk.bf16.vlgmr.msra.gmra.mrb[16].mxu0 %vm1998_vm3, %v1393_v55 }
 0x3d6   : > { %4120 = vmatpush3.bf16.xpose.msra.mxu0 %v2233_v61  ;;  %4121 = vmatprep.mubr.msk.bf16.mxu0 %vm4779_vm2, %v4778_v17 }
 0x3d7   : > { %4131 = vmatprep.subr.bf16.mxu0 %v4778_v17  ;;  %4116 = vmatmul.mubr.msk.bf16.vlgmr.msra.gmra.mrb[8].mxu1 %vm1998_vm3, %v1394_v62 }
 0x3d8   : > { %4126 = vmatpush3.bf16.xpose.msra.mxu1 %v2279_v1  ;;  %4127 = vmatprep.mubr.msk.bf16.mxu1 %vm4779_vm2, %v4778_v17 }
 0x3d9   : > { %4137 = vmatprep.subr.bf16.mxu1 %v4778_v17 }
 0x3dd   : > { %4122 = vmatmul.mubr.msk.bf16.vlgmr.msra.gmra.mrb[20].mxu0 %vm1998_vm3, %v1395_v4 }
 0x3de   : > { %4132 = vmatpush3.bf16.xpose.msra.mxu0 %v2325_v5  ;;  %4133 = vmatprep.mubr.msk.bf16.mxu0 %vm4779_vm2, %v4778_v17 }
 0x3df   : > { %4143 = vmatprep.subr.bf16.mxu0 %v4778_v17  ;;  %4128 = vmatmul.mubr.msk.bf16.vlgmr.msra.gmra.mrb[12].mxu1 %vm1998_vm3, %v1396_v42 }
 0x3e0   : > { %4139 = vmatprep.mubr.msk.bf16.mxu1 %vm4779_vm2, %v4778_v17 }
 0x3e5   : > { %4134 = vmatmul.mubr.msk.bf16.vlgmr.msra.gmra.mrb[24].mxu0 %vm1998_vm3, %v1397_v8 }
 0x3e6   : > { %4145 = vmatprep.mubr.msk.bf16.mxu0 %vm4779_vm2, %v4778_v17 }
 0x49a   : > { %v2039_v14 = vpop.f32.mrb[0].mxu1 }
 0x49b   : > { %v2367_v15 = vmul.f32 0.35355338, %v2039_v14  ;;  %v4093_v16 = vpop.f32.mrb[1].mxu1 }
 0x49c   : > { %v2042_v19 = vpop.f32.mrb[2].mxu1 }
 0x49d   : > { %v4094_v20 = vpop.f32.mrb[3].mxu1  ;;  %v5468_v25 = vadd.f32 %v2380_v13, %v2367_v15 }
 0x49f   : > { %v2395_v31 = vsel %vm1998_vm3, %v5468_v25, -inf }
 0x4a0   : > { %v2085_v32 = vpop.f32.mrb[12].mxu0  ;;  %2396 = vmax.xlane.f32.xlu0 %v2395_v31 }
 0x4a1   : > { %v2368_v33 = vmul.f32 0.35355338, %v2085_v32  ;;  %v4099_v34 = vpop.f32.mrb[13].mxu0 }
 0x4a2   : > { %v2088_v35 = vpop.f32.mrb[14].mxu0  ;;  %v2131_v41 = vpop.f32.mrb[4].mxu1 }
 0x4a3   : > { %v4100_v43 = vpop.f32.mrb[15].mxu0  ;;  %v2388_v44 = vadd.f32 %v2384_v30, %v2368_v33  ;;  %v2369_v45 = vmul.f32 0.35355338, %v2131_v41  ;;  %v4105_v36 = vpop.f32.mrb[5].mxu1 }
 0x4a4   : > { %v2134_v37 = vpop.f32.mrb[6].mxu1 }
 0x4a5   : > { %v2398_v38 = vsel %vm1998_vm3, %v2388_v44, -inf  ;;  %v4106_v26 = vpop.f32.mrb[7].mxu1  ;;  %v5474_v27 = vadd.f32 %v2380_v13, %v2369_v45 }
 0x4a6   : > { %2399 = vmax.xlane.f32.xlu1 %v2398_v38 }
 0x4a7   : > { %v2401_v28 = vsel %vm1998_vm3, %v5474_v27, -inf }
 0x4a8   : > { %v2177_v29 = vpop.f32.mrb[16].mxu0  ;;  %2402 = vmax.xlane.f32.xlu0 %v2401_v28 }
 0x4a9   : > { %v2370_v39 = vmul.f32 0.35355338, %v2177_v29  ;;  %v4111_v56 = vpop.f32.mrb[17].mxu0 }
 0x4aa   : > { %v2180_v40 = vpop.f32.mrb[18].mxu0  ;;  %v2223_v46 = vpop.f32.mrb[8].mxu1 }
 0x4ab   : > { %v4112_v21 = vpop.f32.mrb[19].mxu0  ;;  %v5478_v22 = vadd.f32 %v2384_v30, %v2370_v39  ;;  %v2371_v23 = vmul.f32 0.35355338, %v2223_v46  ;;  %v4117_v24 = vpop.f32.mrb[9].mxu1 }
 0x4ac   : > { %v2226_v47 = vpop.f32.mrb[10].mxu1 }
 0x4ad   : > { %v2404_v49 = vsel %vm1998_vm3, %v5478_v22, -inf  ;;  %v4118_v51 = vpop.f32.mrb[11].mxu1  ;;  %v2391_v52 = vadd.f32 %v2380_v13, %v2371_v23 }
 0x4ae   : > { %2405 = vmax.xlane.f32.xlu0 %v2404_v49 }
 0x4af   : > { %v2407_v58 = vsel %vm1998_vm3, %v2391_v52, -inf }
 0x4b0   : > { %v2269_v53 = vpop.f32.mrb[20].mxu0 }
 0x4b1   : > { %v2372_v55 = vmul.f32 0.35355338, %v2269_v53  ;;  %v4123_v57 = vpop.f32.mrb[21].mxu0 }
 0x4b2   : > { %2408 = vmax.xlane.f32.xlu0 %v2407_v58  ;;  %v2272_v59 = vpop.f32.mrb[22].mxu0  ;;  %v2315_v61 = vpop.f32.mrb[12].mxu1 }
 0x4b3   : > { %v4124_v54 = vpop.f32.mrb[23].mxu0  ;;  %v2392_v62 = vadd.f32 %v2384_v30, %v2372_v55  ;;  %v2373_v63 = vmul.f32 0.35355338, %v2315_v61  ;;  %v4129_v1 = vpop.f32.mrb[13].mxu1 }
 0x4b4   : > { %v2318_v2 = vpop.f32.mrb[14].mxu1 }
 0x4b5   : > { %v2410_v3 = vsel %vm1998_vm3, %v2392_v62, -inf  ;;  %v4130_v4 = vpop.f32.mrb[15].mxu1  ;;  %v2393_v5 = vadd.f32 %v2380_v13, %v2373_v63 }
 0x4b6   : > { %2411 = vmax.xlane.f32.xlu1 %v2410_v3 }
 0x4b7   : > { %v2413_v42 = vsel %vm1998_vm3, %v2393_v5, -inf }
 0x4b8   : > { %v2361_v6 = vpop.f32.mrb[24].mxu0  ;;  %2414 = vmax.xlane.f32.xlu0 %v2413_v42 }
 0x4b9   : > { %v2374_v8 = vmul.f32 0.35355338, %v2361_v6  ;;  %v4135_v12 = vpop.f32.mrb[25].mxu0 }
 0x4ba   : > { %v2364_v14 = vpop.f32.mrb[26].mxu0 }
 0x4bb   : > { %v4136_v15 = vpop.f32.mrb[27].mxu0  ;;  %v2394_v16 = vadd.f32 %v2384_v30, %v2374_v8 }
 0x4bd   : > { %v2416_v13 = vsel %vm1998_vm3, %v2394_v16, -inf }
 0x4c7   : > { %1702 = vrot.lane.b32.xlu1 %v5279_v50, %s4780_s16 }
 0x4cb   : > { %1706 = vrot.lane.b32.xlu1 %v5274_v48, %s4781_s10 }
 0x4ce   : > { %1700 = vrot.lane.b32.xlu0 %v5274_v48, %s4780_s16 }
 0x4ef   : > { %2417 = vmax.xlane.f32.xlu1 %v2416_v13 }
 0x500   : > { %1708 = vrot.lane.b32.xlu1 %v5279_v50, %s4781_s10 }
 0x52d   : > { %v2397_v18 = vpop.xlane.xlu0 %2396 }
 0x52e   : > { %v2419_v19 = vsub.f32 %v5468_v25, %v2397_v18 }
 0x530   : > { %v2427_v20 = vmul.f32 1.442695, %v2419_v19 }
 0x532   : > { %4393 = vpow2.f32 %v2427_v20 }
 0x533   : > { %v2400_v30 = vpop.xlane.xlu1 %2399 }
 0x534   : > { %v2420_v31 = vsub.f32 %v2388_v44, %v2400_v30 }
 0x535   : > { %v2403_v37 = vpop.xlane.xlu0 %2402 }
 0x536   : > { %v2429_v32 = vmul.f32 1.442695, %v2420_v31  ;;  %v2421_v26 = vsub.f32 %v5474_v27, %v2403_v37 }
 0x538   : > { %4395 = vpow2.f32 %v2429_v32  ;;  %v2431_v29 = vmul.f32 1.442695, %v2421_v26 }
 0x53a   : > { %4397 = vpow2.f32 %v2431_v29 }
 0x53b   : > { %v2406_v38 = vpop.xlane.xlu0 %2405 }
 0x53c   : > { %v5495_v33 = vpop.eup %4393  ;;  %v2422_v56 = vsub.f32 %v5478_v22, %v2406_v38 }
 0x53d   : > { %v2443_v34 = vsel %vm1998_vm3, %v5495_v33, 0.0 }
 0x53e   : > { %2444 = vadd.xlane.f32.xlu0 %v2443_v34  ;;  %v2433_v21 = vmul.f32 1.442695, %v2422_v56 }
 0x53f   : > { %v2409_v28 = vpop.xlane.xlu0 %2408 }
 0x540   : > { %v2423_v39 = vsub.f32 %v2391_v52, %v2409_v28 }
 0x542   : > { %v5499_v35 = vpop.eup %4395  ;;  %v2435_v40 = vmul.f32 1.442695, %v2423_v39 }
 0x543   : > { %v2412_v41 = vpop.xlane.xlu1 %2411  ;;  %v2446_v43 = vsel %vm1998_vm3, %v5499_v35, 0.0 }
 0x544   : > { %2447 = vadd.xlane.f32.xlu1 %v2446_v43  ;;  %v2424_v46 = vsub.f32 %v2392_v62, %v2412_v41  ;;  %4399 = vpow2.f32 %v2435_v40  ;;  %v5513_v49 = vpop.eup %4397 }
 0x545   : > { %v2415_v23 = vpop.xlane.xlu0 %2414  ;;  %4401 = vpow2.f32 %v2433_v21  ;;  %v2449_v27 = vsel %vm1998_vm3, %v5513_v49, 0.0 }
 0x546   : > { %v2425_v24 = vsub.f32 %v2393_v5, %v2415_v23  ;;  %v2437_v47 = vmul.f32 1.442695, %v2424_v46 }
 0x547   : > { %v5503_v25 = vpop.permute.xlu1 %1702 }
 0x548   : > { %4403 = vpow2.f32 %v2437_v47 }
 0x549   : > { %v1701_v2 = vpop.permute.xlu0 %1700 }
 0x54b   : > { %v1707_v45 = vpop.permute.xlu1 %1706 }
 0x54c   : > { %v1718_v44 = vcombine.low %v5274_v48, %v1707_v45  ;;  %v1719_v36 = vcombine.high %v5274_v48, %v1707_v45 }
 0x54e   : > { %v5517_v51 = vpop.eup %4399  ;;  %v1726_v14 = vrot.slane %v1718_v44, %v5293_v0  ;;  %v1733_v15 = vrot.slane %v1719_v36, %v5293_v0 }
 0x54f   : > { %v5519_v22 = vpop.eup %4401  ;;  %v2455_v52 = vsel %vm1998_vm3, %v5517_v51, 0.0 }
 0x550   : > { %v2452_v55 = vsel %vm1998_vm3, %v5519_v22, 0.0 }
 0x552   : > { %v5523_v53 = vpop.eup %4403 }
 0x553   : > { %v2458_v57 = vsel %vm1998_vm3, %v5523_v53, 0.0 }
 0x554   : > { %1712 = vrot.lane.b32.xlu0 %v5274_v48, %s4782_s26  ;;  %v2439_v48 = vmul.f32 1.442695, %v2425_v24 }
 0x555   : > { %1714 = vrot.lane.b32.xlu1 %v5279_v50, %s4782_s26 }
 0x556   : > { %4405 = vpow2.f32 %v2439_v48 }
 0x560   : > { %v5529_v58 = vpop.eup %4405 }
 0x561   : > { %v2461_v62 = vsel %vm1998_vm3, %v5529_v58, 0.0 }
 0x573   : > { %2450 = vadd.xlane.f32.xlu0 %v2449_v27 }
 0x577   : > { %2456 = vadd.xlane.f32.xlu0 %v2455_v52 }
 0x579   : > { %2453 = vadd.xlane.f32.xlu1 %v2452_v55 }
 0x57b   : > { %2459 = vadd.xlane.f32.xlu0 %v2458_v57 }
 0x57c   : > { %v2418_v59 = vpop.xlane.xlu1 %2417 }
 0x57d   : > { %v2426_v61 = vsub.f32 %v2394_v16, %v2418_v59 }
 0x57f   : > { %v2441_v54 = vmul.f32 1.442695, %v2426_v61  ;;  %2462 = vadd.xlane.f32.xlu0 %v2461_v62 }
 0x580   : > { %v1709_v4 = vpop.permute.xlu1 %1708 }
 0x581   : > { %4407 = vpow2.f32 %v2441_v54  ;;  %v1786_v12 = vcombine.low %v5279_v50, %v1709_v4  ;;  %v1787_v18 = vcombine.high %v5279_v50, %v1709_v4 }
 0x583   : > { %v1794_v34 = vrot.slane %v1786_v12, %v5293_v0  ;;  %v1801_v37 = vrot.slane %v1787_v18, %v5293_v0 }
 0x58b   : > { %v5533_v63 = vpop.eup %4407 }
 0x58c   : > { %v2464_v1 = vsel %vm1998_vm3, %v5533_v63, 0.0 }
 0x58d   : > { %2465 = vadd.xlane.f32.xlu1 %v2464_v1 }
 0x5cb   : > { %v2445_v3 = vpop.xlane.xlu0 %2444 }
 0x5cc   : > { %4409 = vrcp.f32 %v2445_v3 }
 0x5cf   : > { %v1713_v5 = vpop.permute.xlu0 %1712 }
 0x5d0   : > { %v1734_v42 = vcombine.low %v1701_v2, %v1713_v5  ;;  %v1735_v6 = vcombine.high %v1701_v2, %v1713_v5 }
 0x5d1   : > { %v2448_v8 = vpop.xlane.xlu1 %2447 }
 0x5d2   : > { %v1742_v16 = vrot.slane %v1734_v42, %v5293_v0  ;;  %v1749_v13 = vrot.slane %v1735_v6, %v5293_v0  ;;  %4411 = vrcp.f32 %v2448_v8 }
 0x5d4   : > { %v1750_v19 = vcombine.low %v1726_v14, %v1742_v16  ;;  %v1751_v20 = vcombine.high %v1726_v14, %v1742_v16  ;;  %v1766_v30 = vcombine.low %v1733_v15, %v1749_v13  ;;  %v1767_v31 = vcombine.high %v1733_v15, %v1749_v13 }
 0x5d5   : > { %v1715_v32 = vpop.permute.xlu1 %1714 }
 0x5d6   : > { %v1802_v41 = vcombine.low %v5503_v25, %v1715_v32  ;;  %v1803_v43 = vcombine.high %v5503_v25, %v1715_v32  ;;  %v1758_v45 = vrot.slane %v1750_v19, %v5296_v7  ;;  %v1765_v44 = vrot.slane %v1751_v20, %v5296_v7  ;;  %v4410_v42 = vpop.eup %4409 }
 0x5d7   : > { %v1774_v36 = vrot.slane %v1766_v30, %v5296_v7  ;;  %v1781_v50 = vrot.slane %v1767_v31, %v5296_v7  ;;  %v2475_v31 = vmul.f32 %v4410_v42, %v5495_v33 }
 0x5d8   : > { %v1810_v38 = vrot.slane %v1802_v41, %v5293_v0  ;;  %v1817_v26 = vrot.slane %v1803_v43, %v5293_v0  ;;  %v1854_v28 = vcombine.low %v1758_v45, %v1765_v44  ;;  %v3949_v29 = vcombine.high %v1758_v45, %v1765_v44 }
 0x5d9   : > { %v1870_v39 = vcombine.low %v1774_v36, %v1781_v50  ;;  %v3950_v56 = vcombine.high %v1774_v36, %v1781_v50 }
 0x5da   : > { %v1818_v25 = vcombine.low %v1794_v34, %v1810_v38  ;;  %v1819_v40 = vcombine.high %v1794_v34, %v1810_v38  ;;  %v1834_v46 = vcombine.low %v1801_v37, %v1817_v26  ;;  %v1835_v21 = vcombine.high %v1801_v37, %v1817_v26 }
 0x5db   : > { %v1861_v23 = vrot.slane %v1854_v28, %v5293_v0  ;;  %v1869_v24 = vrot.slane %v3949_v29, %v5293_v0  ;;  %v1877_v47 = vrot.slane %v1870_v39, %v5293_v0  ;;  %v1885_v48 = vrot.slane %v3950_v56, %v5293_v0 }
 0x5dc   : > { %v1826_v27 = vrot.slane %v1818_v25, %v5296_v7  ;;  %v1833_v52 = vrot.slane %v1819_v40, %v5296_v7  ;;  %v1842_v55 = vrot.slane %v1834_v46, %v5296_v7  ;;  %v1849_v57 = vrot.slane %v1835_v21, %v5296_v7  ;;  %v4412_v19 = vpop.eup %4411 }
 0x5dd   : > { %v1886_v59 = vcombine.low %v1861_v23, %v1869_v24  ;;  %v1902_v61 = vcombine.low %v1877_v47, %v1885_v48  ;;  %v1887_v5 = vcombine.high %v1861_v23, %v1869_v24  ;;  %v1903_v18 = vcombine.high %v1877_v47, %v1885_v48 }
 0x5de   : > { %v1922_v54 = vcombine.low %v1826_v27, %v1833_v52  ;;  %v3951_v62 = vcombine.high %v1826_v27, %v1833_v52  ;;  %v1938_v1 = vcombine.low %v1842_v55, %v1849_v57  ;;  %v3952_v2 = vcombine.high %v1842_v55, %v1849_v57 }
 0x5df   : > { %v1894_v3 = vrot.slane %v1886_v59, %v5296_v7  ;;  %v1910_v4 = vrot.slane %v1902_v61, %v5296_v7  ;;  %v1901_v13 = vrot.slane %v1887_v5, %v5296_v7  ;;  %v1917_v34 = vrot.slane %v1903_v18, %v5296_v7 }
 0x5e0   : > { %v1929_v6 = vrot.slane %v1922_v54, %v5293_v0  ;;  %v1937_v8 = vrot.slane %v3951_v62, %v5293_v0  ;;  %v1945_v12 = vrot.slane %v1938_v1, %v5293_v0  ;;  %v1953_v14 = vrot.slane %v3952_v2, %v5293_v0 }
 0x5e1   : > { %v1918_v15 = vcombine.low %v1894_v3, %v1910_v4  ;;  %v1919_v16 = vcombine.high %v1894_v3, %v1910_v4  ;;  %v1920_v36 = vcombine.low %v1901_v13, %v1917_v34  ;;  %v5573_v50 = vcombine.high %v1901_v13, %v1917_v34 }
 0x5e2   : > { %v1954_v20 = vcombine.low %v1929_v6, %v1937_v8  ;;  %v1970_v30 = vcombine.low %v1945_v12, %v1953_v14  ;;  %v2483_v26 = vpack.c.bf16 %v2475_v31, %v2475_v31  ;;  %v2476_v33 = vmul.f32 %v4412_v19, %v5499_v35 }
 0x5e3   : > { %v1990_v32 = vpack.c.bf16 %v1918_v15, %v1918_v15  ;;  %v1992_v44 = vpack.c.bf16 %v1919_v16, %v1919_v16  ;;  %v1955_v23 = vcombine.high %v1929_v6, %v1937_v8  ;;  %v1971_v24 = vcombine.high %v1945_v12, %v1953_v14 }
 0x5e4   : > { %v1962_v41 = vrot.slane %v1954_v20, %v5296_v7  ;;  %v1978_v43 = vrot.slane %v1970_v30, %v5296_v7  ;;  %v2484_v25 = vpack.c.bf16 %v2476_v33, %v2476_v33  ;;  %v1994_v59 = vpack.c.bf16 %v1920_v36, %v1920_v36 }
 0x5e5   : > { %v2496_v45 = vsel %vm2494_vm6, %v1990_v32, 0  ;;  %v2588_v29 = vsel %vm2494_vm6, %v1992_v44, 0  ;;  %v1969_v48 = vrot.slane %v1955_v23, %v5296_v7  ;;  %v1985_v27 = vrot.slane %v1971_v24, %v5296_v7 }
 0x5e6   : > { %4138 = vmatpush3.bf16.msra.mxu1 %v2496_v45  ;;  %v1986_v37 = vcombine.low %v1962_v41, %v1978_v43  ;;  %v1987_v38 = vcombine.high %v1962_v41, %v1978_v43  ;;  %v2680_v2 = vsel %vm2494_vm6, %v1994_v59, 0  ;;  %v1996_v6 = vpack.c.bf16 %v5573_v50, %v5573_v50 }
 0x5e7   : > { %4149 = vmatprep.subr.bf16.mxu1 %v4778_v17  ;;  %v1988_v61 = vcombine.low %v1969_v48, %v1985_v27  ;;  %v1989_v12 = vcombine.high %v1969_v48, %v1985_v27 }
 0x5e8   : > { %v1991_v28 = vpack.c.bf16 %v1986_v37, %v1986_v37  ;;  %v1993_v56 = vpack.c.bf16 %v1987_v38, %v1987_v38  ;;  %v2772_v15 = vsel %vm2494_vm6, %v1996_v6, 0 }
 0x5e9   : > { %4140 = vmatmul.mubr.msk.bf16.vlgmr.msra.gmra.mrb[16].mxu1 %vm1998_vm3, %v2483_v26  ;;  %v1995_v4 = vpack.c.bf16 %v1988_v61, %v1988_v61  ;;  %v1997_v13 = vpack.c.bf16 %v1989_v12, %v1989_v12 }
 0x5ea   : > { %4150 = vmatpush3.bf16.msra.mxu1 %v2588_v29  ;;  %v2542_v39 = vsel %vm2494_vm6, %v1991_v28, 0  ;;  %4151 = vmatprep.mubr.msk.bf16.mxu1 %vm4779_vm2, %v4778_v17  ;;  %v2634_v35 = vsel %vm2494_vm6, %v1993_v56, 0 }
 0x5eb   : > { %4144 = vmatpush3.bf16.msra.mxu0 %v2542_v39  ;;  %4161 = vmatprep.subr.bf16.mxu1 %v4778_v17  ;;  %v2726_v8 = vsel %vm2494_vm6, %v1995_v4, 0 }
 0x5ec   : > { %4155 = vmatprep.subr.bf16.mxu0 %v4778_v17 }
 0x5ee   : > { %4146 = vmatmul.mubr.msk.bf16.vlgmr.msra.gmra.mrb[28].mxu0 %vm1998_vm3, %v2484_v25 }
 0x5ef   : > { %4156 = vmatpush3.bf16.msra.mxu0 %v2634_v35  ;;  %4157 = vmatprep.mubr.msk.bf16.mxu0 %vm4779_vm2, %v4778_v17 }
 0x5f0   : > { %4167 = vmatprep.subr.bf16.mxu0 %v4778_v17 }
 0x600   : > { %v2451_v40 = vpop.xlane.xlu0 %2450 }
 0x601   : > { %4413 = vrcp.f32 %v2451_v40 }
 0x604   : > { %v2457_v46 = vpop.xlane.xlu0 %2456 }
 0x605   : > { %4415 = vrcp.f32 %v2457_v46 }
 0x606   : > { %v2454_v21 = vpop.xlane.xlu1 %2453 }
 0x607   : > { %4417 = vrcp.f32 %v2454_v21 }
 0x608   : > { %v2460_v47 = vpop.xlane.xlu0 %2459 }
 0x609   : > { %4419 = vrcp.f32 %v2460_v47 }
 0x60b   : > { %v4414_v52 = vpop.eup %4413 }
 0x60c   : > { %v2477_v55 = vmul.f32 %v4414_v52, %v5513_v49  ;;  %v2463_v57 = vpop.xlane.xlu0 %2462 }
 0x60d   : > { %4421 = vrcp.f32 %v2463_v57 }
 0x60e   : > { %v2485_v54 = vpack.c.bf16 %v2477_v55, %v2477_v55 }
 0x60f   : > { %v4416_v62 = vpop.eup %4415 }
 0x610   : > { %4152 = vmatmul.mubr.msk.bf16.vlgmr.msra.gmra.mrb[20].mxu1 %vm1998_vm3, %v2485_v54  ;;  %v2479_v49 = vmul.f32 %v4416_v62, %v5517_v51 }
 0x611   : > { %v4418_v1 = vpop.eup %4417  ;;  %4162 = vmatpush3.bf16.msra.mxu1 %v2680_v2  ;;  %4163 = vmatprep.mubr.msk.bf16.mxu1 %vm4779_vm2, %v4778_v17 }
 0x612   : > { %v2478_v3 = vmul.f32 %v4418_v1, %v5519_v22  ;;  %4173 = vmatprep.subr.bf16.mxu1 %v4778_v17  ;;  %v2487_v22 = vpack.c.bf16 %v2479_v49, %v2479_v49 }
 0x613   : > { %v4420_v42 = vpop.eup %4419 }
 0x614   : > { %v2486_v5 = vpack.c.bf16 %v2478_v3, %v2478_v3  ;;  %v2480_v51 = vmul.f32 %v4420_v42, %v5523_v53  ;;  %v2818_v53 = vsel %vm2494_vm6, %v1997_v13, 0 }
 0x616   : > { %4158 = vmatmul.mubr.msk.bf16.vlgmr.msra.gmra.mrb[32].mxu0 %vm1998_vm3, %v2486_v5  ;;  %v2488_v19 = vpack.c.bf16 %v2480_v51, %v2480_v51 }
 0x617   : > { %4168 = vmatpush3.bf16.msra.mxu0 %v2726_v8  ;;  %4169 = vmatprep.mubr.msk.bf16.mxu0 %vm4779_vm2, %v4778_v17  ;;  %v4422_v14 = vpop.eup %4421 }
 0x618   : > { %4179 = vmatprep.subr.bf16.mxu0 %v4778_v17  ;;  %4164 = vmatmul.mubr.msk.bf16.vlgmr.msra.gmra.mrb[24].mxu1 %vm1998_vm3, %v2487_v22  ;;  %v2481_v18 = vmul.f32 %v4422_v14, %v5529_v58 }
 0x619   : > { %4174 = vmatpush3.bf16.msra.mxu1 %v2772_v15  ;;  %4175 = vmatprep.mubr.msk.bf16.mxu1 %vm4779_vm2, %v4778_v17 }
 0x61a   : > { %v2466_v16 = vpop.xlane.xlu1 %2465  ;;  %4185 = vmatprep.subr.bf16.mxu1 %v4778_v17  ;;  %v2489_v20 = vpack.c.bf16 %v2481_v18, %v2481_v18 }
 0x61b   : > { %4423 = vrcp.f32 %v2466_v16 }
 0x61e   : > { %4170 = vmatmul.mubr.msk.bf16.vlgmr.msra.gmra.mrb[36].mxu0 %vm1998_vm3, %v2488_v19 }
 0x61f   : > { %4180 = vmatpush3.bf16.msra.mxu0 %v2818_v53  ;;  %4181 = vmatprep.mubr.msk.bf16.mxu0 %vm4779_vm2, %v4778_v17 }
 0x620   : > { %4193 = vmatprep.subr.bf16.mxu0 %v4778_v17  ;;  %4176 = vmatmul.mubr.msk.bf16.vlgmr.msra.gmra.mrb[28].mxu1 %vm1998_vm3, %v2489_v20 }
 0x621   : > { %4189 = vmatprep.mubr.msk.bf16.mxu1 %vm4779_vm2, %v4778_v17 }
 0x625   : > { %v4424_v58 = vpop.eup %4423 }
 0x626   : > { %v2482_v30 = vmul.f32 %v4424_v58, %v5533_v63 }
 0x628   : > { %v2490_v31 = vpack.c.bf16 %v2482_v30, %v2482_v30 }
 0x62a   : > { %4182 = vmatmul.mubr.msk.bf16.vlgmr.msra.gmra.mrb[40].mxu0 %vm1998_vm3, %v2490_v31 }
 0x62b   : > { %4197 = vmatprep.mubr.msk.bf16.mxu0 %vm4779_vm2, %v4778_v17 }
 0x6bc   : > { %v2532_v32 = vpop.f32.mrb[16].mxu1 }
 0x6bd   : > { %v4141_v34 = vpop.f32.mrb[17].mxu1 }
 0x6be   : > { %v2535_v41 = vpop.f32.mrb[18].mxu1 }
 0x6bf   : > { %v4142_v43 = vpop.f32.mrb[19].mxu1 }
 0x6c1   : > { %v2578_v45 = vpop.f32.mrb[28].mxu0 }
 0x6c2   : > { %v4147_v44 = vpop.f32.mrb[29].mxu0 }
 0x6c3   : > { %v2581_v36 = vpop.f32.mrb[30].mxu0 }
 0x6c4   : > { %v4148_v50 = vpop.f32.mrb[31].mxu0 }
 0x6e3   : > { %v2624_v37 = vpop.f32.mrb[20].mxu1 }
 0x6e4   : > { %v4153_v38 = vpop.f32.mrb[21].mxu1 }
 0x6e5   : > { %v2627_v26 = vpop.f32.mrb[22].mxu1 }
 0x6e6   : > { %v4154_v33 = vpop.f32.mrb[23].mxu1 }
 0x6e9   : > { %v2670_v28 = vpop.f32.mrb[32].mxu0 }
 0x6ea   : > { %v4159_v63 = vpop.f32.mrb[33].mxu0 }
 0x6eb   : > { %v2673_v29 = vpop.f32.mrb[34].mxu0  ;;  %v2716_v39 = vpop.f32.mrb[24].mxu1 }
 0x6ec   : > { %v4160_v56 = vpop.f32.mrb[35].mxu0  ;;  %v2860_v25 = vcombine.low %v2532_v32, %v2716_v39  ;;  %v2861_v35 = vcombine.high %v2532_v32, %v2716_v39  ;;  %v4165_v40 = vpop.f32.mrb[25].mxu1 }
 0x6ed   : > { %v2719_v46 = vpop.f32.mrb[26].mxu1 }
 0x6ee   : > { %v4166_v21 = vpop.f32.mrb[27].mxu1  ;;  %v2868_v62 = vrot.slane %v2860_v25, %v5293_v0  ;;  %v2875_v1 = vrot.slane %v2861_v35, %v5293_v0 }
 0x6f1   : > { %v2762_v23 = vpop.f32.mrb[36].mxu0 }
 0x6f2   : > { %v2928_v24 = vcombine.low %v2578_v45, %v2762_v23  ;;  %v2929_v47 = vcombine.high %v2578_v45, %v2762_v23  ;;  %v4171_v48 = vpop.f32.mrb[37].mxu0 }
 0x6f3   : > { %v2765_v27 = vpop.f32.mrb[38].mxu0  ;;  %v2808_v52 = vpop.f32.mrb[28].mxu1 }
 0x6f4   : > { %v4172_v55 = vpop.f32.mrb[39].mxu0  ;;  %v2876_v57 = vcombine.low %v2624_v37, %v2808_v52  ;;  %v2877_v59 = vcombine.high %v2624_v37, %v2808_v52  ;;  %v4177_v61 = vpop.f32.mrb[29].mxu1  ;;  %v2936_v41 = vrot.slane %v2928_v24, %v5293_v0  ;;  %v2943_v43 = vrot.slane %v2929_v47, %v5293_v0 }
 0x6f5   : > { %v2811_v54 = vpop.f32.mrb[30].mxu1  ;;  %v4377_v61 = vld [vmem:[%s5209_s19] sm:$0xff]  }
 0x6f6   : > { %v2884_v2 = vrot.slane %v2876_v57, %v5293_v0  ;;  %v2891_v3 = vrot.slane %v2877_v59, %v5293_v0  ;;  %v4178_v4 = vpop.f32.mrb[31].mxu1  ;;  %4186 = vmatpush3.bf16.msra.mxu1 %v4377_v61  ;;  %v4381_v61 = vld [vmem:[%s5219_s18] sm:$0xff]  }
 0x6f7   : > { %4187 = vmatprep.subr.bf16.mxu1 %v4778_v17 }
 0x6f8   : > { %v2892_v49 = vcombine.low %v2868_v62, %v2884_v2  ;;  %v2893_v5 = vcombine.high %v2868_v62, %v2884_v2  ;;  %v2908_v42 = vcombine.low %v2875_v1, %v2891_v3  ;;  %v2909_v6 = vcombine.high %v2875_v1, %v2891_v3 }
 0x6fa   : > { %v2900_v8 = vrot.slane %v2892_v49, %v5296_v7  ;;  %v2907_v12 = vrot.slane %v2893_v5, %v5296_v7  ;;  %v2916_v22 = vrot.slane %v2908_v42, %v5296_v7  ;;  %v2923_v14 = vrot.slane %v2909_v6, %v5296_v7 }
 0x6fc   : > { %v2996_v51 = vcombine.low %v2900_v8, %v2907_v12  ;;  %v3969_v15 = vcombine.high %v2900_v8, %v2907_v12  ;;  %v3012_v16 = vcombine.low %v2916_v22, %v2923_v14  ;;  %v3970_v13 = vcombine.high %v2916_v22, %v2923_v14  ;;  %v4378_v22 = vld [vmem:[%s5209_s19 + $0x8] sm:$0xff]  }
 0x6fd   : > { %v2854_v18 = vpop.f32.mrb[40].mxu0  ;;  %4188 = vmatpush3.bf16.msra.mxu1 %v4378_v22 }
 0x6fe   : > { %v2944_v19 = vcombine.low %v2670_v28, %v2854_v18  ;;  %v2945_v53 = vcombine.high %v2670_v28, %v2854_v18  ;;  %v4183_v20 = vpop.f32.mrb[41].mxu0  ;;  %v3003_v58 = vrot.slane %v2996_v51, %v5293_v0  ;;  %v3011_v30 = vrot.slane %v3969_v15, %v5293_v0  ;;  %4201 = vmatprep.subr.bf16.mxu1 %v4778_v17 }
 0x6ff   : > { %v3019_v31 = vrot.slane %v3012_v16, %v5293_v0  ;;  %v3027_v32 = vrot.slane %v3970_v13, %v5293_v0  ;;  %v2857_v34 = vpop.f32.mrb[42].mxu0 }
 0x700   : > { %v2952_v45 = vrot.slane %v2944_v19, %v5293_v0  ;;  %v2959_v44 = vrot.slane %v2945_v53, %v5293_v0  ;;  %v4184_v36 = vpop.f32.mrb[43].mxu0  ;;  %v3029_v50 = vcombine.high %v3003_v58, %v3011_v30  ;;  %v3028_v38 = vcombine.low %v3003_v58, %v3011_v30 }
 0x701   : > { %v3045_v37 = vcombine.high %v3019_v31, %v3027_v32  ;;  %v3044_v26 = vcombine.low %v3019_v31, %v3027_v32 }
 0x702   : > { %v2960_v33 = vcombine.low %v2936_v41, %v2952_v45  ;;  %v2961_v28 = vcombine.high %v2936_v41, %v2952_v45  ;;  %v2976_v63 = vcombine.low %v2943_v43, %v2959_v44  ;;  %v2977_v29 = vcombine.high %v2943_v43, %v2959_v44 }
 0x703   : > { %v3043_v39 = vrot.slane %v3029_v50, %v5296_v7  ;;  %v3059_v56 = vrot.slane %v3045_v37, %v5296_v7  ;;  %v3036_v25 = vrot.slane %v3028_v38, %v5296_v7  ;;  %v3052_v35 = vrot.slane %v3044_v26, %v5296_v7  ;;  %v4433_v26 = vld [vmem:[#allocation2] sm:$0xff] }
 0x704   : > { %v2968_v40 = vrot.slane %v2960_v33, %v5296_v7  ;;  %v2975_v46 = vrot.slane %v2961_v28, %v5296_v7  ;;  %v2984_v21 = vrot.slane %v2976_v63, %v5296_v7  ;;  %v2991_v23 = vrot.slane %v2977_v29, %v5296_v7  ;;  %v4434_v29 = vld [vmem:[#allocation2 + $0x8] sm:$0xff] }
 0x705   : > { %v3062_v24 = vcombine.low %v3043_v39, %v3059_v56  ;;  %v3060_v47 = vcombine.low %v3036_v25, %v3052_v35  ;;  %v3061_v48 = vcombine.high %v3036_v25, %v3052_v35  ;;  %v3063_v27 = vcombine.high %v3043_v39, %v3059_v56 }
 0x706   : > { %v3064_v52 = vcombine.low %v2968_v40, %v2975_v46  ;;  %v3971_v55 = vcombine.high %v2968_v40, %v2975_v46  ;;  %v3080_v57 = vcombine.low %v2984_v21, %v2991_v23  ;;  %v3972_v59 = vcombine.high %v2984_v21, %v2991_v23 }
 0x708   : > { %v3071_v54 = vrot.slane %v3064_v52, %v5293_v0  ;;  %v3079_v62 = vrot.slane %v3971_v55, %v5293_v0  ;;  %v3087_v1 = vrot.slane %v3080_v57, %v5293_v0  ;;  %v3095_v2 = vrot.slane %v3972_v59, %v5293_v0  ;;  %v4379_v57 = vld [vmem:[%s5214_s3] sm:$0xff]   ;;  %v4380_v59 = vld [vmem:[%s5214_s3 + $0x8] sm:$0xff]  }
 0x709   : > { %4194 = vmatpush3.bf16.msra.mxu0 %v4379_v57  ;;  %v3496_v57 = vunpack.c.l.s4 (!%p3991_p0), %v4792_v11 }
 0x70a   : > { %v3097_v3 = vcombine.high %v3071_v54, %v3079_v62  ;;  %v3113_v4 = vcombine.high %v3087_v1, %v3095_v2  ;;  %v3096_v49 = vcombine.low %v3071_v54, %v3079_v62  ;;  %v3112_v5 = vcombine.low %v3087_v1, %v3095_v2  ;;  %4195 = vmatprep.subr.bf16.mxu0 %v4778_v17  ;;  %v4382_v54 = vld [vmem:[%s5219_s18 + $0x8] sm:$0xff]  }
 0x70c   : > { %v3111_v42 = vrot.slane %v3097_v3, %v5296_v7  ;;  %v3127_v6 = vrot.slane %v3113_v4, %v5296_v7  ;;  %v3104_v8 = vrot.slane %v3096_v49, %v5296_v7  ;;  %v3120_v12 = vrot.slane %v3112_v5, %v5296_v7 }
 0x70d   : > { %4196 = vmatpush3.bf16.msra.mxu0 %v4380_v59  ;;  %v3497_v59 = vunpack.c.0.s8 (!%p3991_p0), %v3496_v57 }
 0x70e   : > { %v3130_v14 = vcombine.low %v3111_v42, %v3127_v6  ;;  %v3129_v51 = vcombine.high %v3104_v8, %v3120_v12  ;;  %v3128_v15 = vcombine.low %v3104_v8, %v3120_v12  ;;  %v3131_v0 = vcombine.high %v3111_v42, %v3127_v6  ;;  %v3976_v6 = vld [vmem:[%s726_s20] ss:$0 sm:$0xff] }
 0x710   : > { %v4361_v16 = vpack.i.bf16 %v3130_v14, %v3062_v24  ;;  %v4356_v13 = vpack.i.bf16 %v3129_v51, %v3061_v48  ;;  %v4366_v18 = vpack.i.bf16 %v3131_v0, %v3063_v27  ;;  %v3977_v14 = vld [vmem:[%s734_s14] ss:$0 sm:$0xff] }
 0x712   : > { %4362 = vrot.lane.b32.xlu1 %v4361_v16, %s4785_s23  ;;  %4357 = vrot.lane.b32.xlu0 %v4356_v13, %s4786_s28  ;;  %v4383_v13 = vld [vmem:[%s5219_s18 + $0x10] sm:$0xff]  }
 0x716   : > { %4367 = vrot.lane.b32.xlu1 %v4366_v18, %s4787_s0  ;;  %v4384_v18 = vld [vmem:[%s5219_s18 + $0x18] sm:$0xff]  }
 0x784   : > { %v4363_v19 = vpop.permute.xlu1 %4362  ;;  %v4358_v53 = vpop.permute.xlu0 %4357 }
 0x785   : > { %v4360_v7 = vunpack.i.h.bf16 %v4358_v53  ;;  %v4359_v20 = vunpack.i.l.bf16 %v4358_v53  ;;  %v4365_v58 = vunpack.i.h.bf16 %v4363_v19  ;;  %v4364_v30 = vunpack.i.l.bf16 %v4363_v19  ;;  %v4385_v19 = vld [vmem:[%s5219_s18 + $0x20] sm:$0xff]   ;;  %v4386_v53 = vld [vmem:[%s5219_s18 + $0x28] sm:$0xff]  }
 0x787   : > { %v3156_v31 = vsel %vm1998_vm3, %v3060_v47, %v4359_v20  ;;  %v3157_v32 = vsel %vm1998_vm3, %v3128_v15, %v4360_v7  ;;  %v4387_v7 = vld [vmem:[%s5219_s18 + $0x30] sm:$0xff]   ;;  %v4388_v20 = vld [vmem:[%s5219_s18 + $0x38] sm:$0xff]  }
 0x788   : > { %v4368_v34 = vpop.permute.xlu1 %4367  ;;  %v3159_v45 = vsel %vm3158_vm7, %v3156_v31, %v4364_v30  ;;  %v3160_v44 = vsel %vm3158_vm7, %v3157_v32, %v4365_v58  ;;  %v3978_v58 = vld [vmem:[%s710_s1] ss:$0 sm:$0xff] }
 0x789   : > { %v4370_v41 = vunpack.i.h.bf16 %v4368_v34  ;;  %v4369_v43 = vunpack.i.l.bf16 %v4368_v34 }
 0x78b   : > { %v3162_v36 = vsel %vm3161_vm8, %v3159_v45, %v4369_v43  ;;  %v3163_v50 = vsel %vm3161_vm8, %v3160_v44, %v4370_v41 }
 0x78c   : > { %v3164_v37 = vpack.c.bf16 %v3163_v50, %v3162_v36 }
 0x78e   : > { %4190 = vmatmul.mubr.msk.bf16.vlgmr.msra.gmra.mrb[32].mxu1 %vm879_vm1, %v3164_v37 }
 0x78f   : > { %4217 = vmatprep.mubr.msk.bf16.mxu1 %vm4779_vm2, %v4778_v17  ;;  %4202 = vmatpush3.bf16.msra.mxu1 %v4381_v61 }
 0x790   : > { %4203 = vmatprep.subr.bf16.mxu1 %v4778_v17 }
 0x793   : > { %4204 = vmatpush3.bf16.msra.mxu1 %v4382_v54  ;;  %v3500_v54 = vsub.s32 (!%p3991_p0), %v3497_v59, %v5290_v60 }
 0x794   : > { %4205 = vmatprep.subr.bf16.mxu1 %v4778_v17 }
 0x797   : > { %4206 = vmatpush3.bf16.msra.mxu1 %v4383_v13 }
 0x798   : > { %4207 = vmatprep.subr.bf16.mxu1 %v4778_v17 }
 0x79b   : > { %4208 = vmatpush3.bf16.msra.mxu1 %v4384_v18 }
 0x79c   : > { %4209 = vmatprep.subr.bf16.mxu1 %v4778_v17 }
 0x79f   : > { %4210 = vmatpush3.bf16.msra.mxu1 %v4385_v19 }
 0x7a0   : > { %4211 = vmatprep.subr.bf16.mxu1 %v4778_v17 }
 0x7a3   : > { %4212 = vmatpush3.bf16.msra.mxu1 %v4386_v53 }
 0x7a4   : > { %4213 = vmatprep.subr.bf16.mxu1 %v4778_v17 }
 0x7a7   : > { %4214 = vmatpush3.bf16.msra.mxu1 %v4387_v7 }
 0x7a8   : > { %4215 = vmatprep.subr.bf16.mxu1 %v4778_v17 }
 0x7ab   : > { %4216 = vmatpush3.bf16.msra.mxu1 %v4388_v20 }
 0x861   : > { %v3218_v38 = vpop.f32.mrb[32].mxu1 }
 0x862   : > { %v5666_v33 = vadd.f32 %v4433_v26, %v3218_v38  ;;  %v4191_v28 = vpop.f32.mrb[33].mxu1 }
 0x863   : > { %v3221_v63 = vpop.f32.mrb[34].mxu1 }
 0x864   : > { %v5668_v39 = vadd.f32 %v4434_v29, %v3221_v63  ;;  %v4192_v56 = vpop.f32.mrb[35].mxu1  ;;  %v3229_v25 = vsel %vm879_vm1, %v5666_v33, 0.0 }
 0x865   : > { %3230 = vadd.xlane.f32.xlu1 %v3229_v25  ;;  %v3982_v56 = vld [vmem:[%s718_s21] ss:$0 sm:$0xff] }
 0x866   : > { %v3232_v35 = vsel %vm879_vm1, %v5668_v39, 0.0 }
 0x867   : > { %3233 = vadd.xlane.f32.xlu0 %v3232_v35 }
 0x8f2   : > { %v3231_v40 = vpop.xlane.xlu1 %3230 }
 0x8f3   : > { %v3235_v46 = vmul.f32 0.03125, %v3231_v40 }
 0x8f4   : > { %v3234_v21 = vpop.xlane.xlu0 %3233 }
 0x8f5   : > { %v3237_v23 = vsub.f32 %v5666_v33, %v3235_v46  ;;  %v3236_v24 = vmul.f32 0.03125, %v3234_v21 }
 0x8f7   : > { %v3238_v47 = vsub.f32 %v5668_v39, %v3236_v24  ;;  %v3239_v48 = vmul.f32 %v3237_v23, %v3237_v23 }
 0x8f9   : > { %v3241_v27 = vsel %vm879_vm1, %v3239_v48, 0.0  ;;  %v3240_v52 = vmul.f32 %v3238_v47, %v3238_v47  ;;  %v4788_v48 = vmov (!%p3991_p0), 7  }
 0x8fa   : > { %3242 = vadd.xlane.f32.xlu0 %v3241_v27  ;;  %v4789_v27 = vmov (!%p3991_p0), 0  }
 0x8fb   : > { %v3244_v55 = vsel %vm879_vm1, %v3240_v52, 0.0  ;;  %4435 = vset.pattern.permute.xlu0 (!%p3991_p0), %v4788_v48  ;;  %v3474_v52 = vsel (!%p3991_p0), %vm3472_vm9, 1, %v4789_v27 }
 0x8fe   : > { %3245 = vadd.xlane.f32.xlu0 %v3244_v55  ;;  %v4790_v55 = vmov (!%p3991_p0), 0.0  }
 0x8ff   : > { %4221 = vmatprep.subr.bf16.mxu0 (!%p3991_p0), %v4790_v55 }
 0x914   : > { %3477 = vperm.xlu0 (!%p3991_p0), %4435, %v3474_v52  }
 0x987   : > { %v3243_v62 = vpop.xlane.xlu0 %3242 }
 0x988   : > { %v3247_v1 = vmul.f32 0.03125, %v3243_v62  ;;  %v4436_v62 = vld [vmem:[#allocation3 + $0x4] ss:$0 sps:$4 sm:$0xff] (!%p3991_p0)  }
 0x98a   : > { %v3249_v2 = vadd.f32 1e-05, %v3247_v1 }
 0x98b   : > { %v3246_v3 = vpop.xlane.xlu0 %3245 }
 0x98c   : > { %4425 = vrsqrt.f32 %v3249_v2  ;;  %v3248_v4 = vmul.f32 0.03125, %v3246_v3  ;;  %v4437_v2 = vld [vmem:[#allocation3 + $0xc] ss:$0 sps:$4 sm:$0xff] (!%p3991_p0)  }
 0x98e   : > { %v3250_v49 = vadd.f32 1e-05, %v3248_v4  ;;  %v3539_v4 = vrot.slane (!%p3991_p0), %v4436_v62, %v3500_v54 }
 0x990   : > { %4427 = vrsqrt.f32 %v3250_v49 }
 0x996   : > { %v4426_v5 = vpop.eup %4425 }
 0x997   : > { %v3253_v42 = vmul.f32 %v4426_v5, %v3237_v23  ;;  %v3556_v5 = vrot.slane (!%p3991_p0), %v4437_v2, %v3500_v54 }
 0x999   : > { %v3261_v12 = vmul.f32 %v3976_v6, %v3253_v42 }
 0x99a   : > { %v4428_v8 = vpop.eup %4427 }
 0x99b   : > { %v3254_v22 = vmul.f32 %v4428_v8, %v3238_v47  ;;  %v3269_v15 = vadd.f32 %v3977_v14, %v3261_v12  ;;  %v3557_v12 = vcombine.high (!%p3991_p0), %v3556_v5, %v3556_v5 }
 0x99d   : > { %v3262_v51 = vmul.f32 %v3976_v6, %v3254_v22  ;;  %v3540_v6 = vcombine.high (!%p3991_p0), %v3539_v4, %v3539_v4 }
 0x99f   : > { %v3270_v0 = vadd.f32 %v3977_v14, %v3262_v51  ;;  %v3478_v14 = vpop.permute.xlu0 (!%p3991_p0), %3477  ;;  %v3547_v51 = vrot.slane (!%p3991_p0), %v3540_v6, %v3500_v54 }
 0x9a1   : > { %v3271_v16 = vpack.c.bf16 %v3270_v0, %v3269_v15  ;;  %v3564_v0 = vrot.slane (!%p3991_p0), %v3557_v12, %v3500_v54  ;;  %v3548_v60 = vcombine.high (!%p3991_p0), %v3547_v51, %v3547_v51 }
 0x9a3   : > { %4198 = vmatmul.mubr.msk.bf16.vlgmr.msra.gmra.mrb[44].mxu0 %vm879_vm1, %v3271_v16  ;;  %v3482_v16 = vrot.slane (!%p3991_p0), %v3478_v14, %v5460_v10  ;;  %v3565_v53 = vcombine.high (!%p3991_p0), %v3564_v0, %v3564_v0 }
 0x9a4   : > { %4225 = vmatprep.mubr.msk.bf16.mxu0 (!%p3991_p0), %vm4791_vm11, %v4790_v55 }
 0x9a5   : > { %vm3490_vm12 = vcmp.eq.s32.totalorder (!%p3991_p0), %v3482_v16, 1 }
 0xa76   : > { %v3332_v30 = vpop.f32.mrb[44].mxu0 }
 0xa77   : > { %v3333_v31 = vadd.f32 %v3978_v58, %v3332_v30  ;;  %v4199_v32 = vpop.f32.mrb[45].mxu0 }
 0xa78   : > { %v3335_v34 = vpop.f32.mrb[46].mxu0 }
 0xa79   : > { %v3341_v41 = vmul.f32 0.70710677, %v3333_v31  ;;  %v3336_v43 = vadd.f32 %v3978_v58, %v3335_v34  ;;  %v4200_v45 = vpop.f32.mrb[47].mxu0  ;;  %v3339_v38 = vmul.f32 0.5, %v3333_v31 }
 0xa7b   : > { %4429 = verf.f32 %v3341_v41  ;;  %v3342_v44 = vmul.f32 0.70710677, %v3336_v43  ;;  %v3340_v26 = vmul.f32 0.5, %v3336_v43  ;;  %v3992_v41 = vld [vmem:[%s5851_s8] ss:$0 sm:$0xff] (!%p3991_p0) }
 0xa7d   : > { %4431 = verf.f32 %v3342_v44 }
 0xa85   : > { %v4430_v36 = vpop.eup %4429 }
 0xa86   : > { %v3345_v50 = vadd.f32 1.0, %v4430_v36 }
 0xa87   : > { %v4432_v37 = vpop.eup %4431 }
 0xa88   : > { %v3346_v17 = vadd.f32 1.0, %v4432_v37  ;;  %v3347_v28 = vmul.f32 %v3345_v50, %v3339_v38 }
 0xa8a   : > { %v3348_v63 = vmul.f32 %v3346_v17, %v3340_v26 }
 0xa8c   : > { %v3349_v29 = vpack.c.bf16 %v3348_v63, %v3347_v28 }
 0xa8e   : > { %4218 = vmatmul.mubr.bf16.vlgmr.msra.gmra.mrb[36].mxu1 %v3349_v29 }
 0xb61   : > { %v3455_v25 = vpop.f32.mrb[36].mxu1 }
 0xb62   : > { %v3456_v35 = vadd.f32 %v3982_v56, %v3455_v25  ;;  %v4219_v40 = vpop.f32.mrb[37].mxu1  ;;  %3469 = sbr.rel (%p3991_p0) target bundleno = 3272 (0xcc8), region = 124 }
 0xb63   : > { %v3458_v46 = vpop.f32.mrb[38].mxu1 }
 0xb64   : > { %v3462_v21 = vadd.f32 %v3456_v35, %v5666_v33  ;;  %v3459_v23 = vadd.f32 %v3982_v56, %v3458_v46  ;;  %v4220_v24 = vpop.f32.mrb[39].mxu1  ;;  %v3475_v33 = vsel (!%p3991_p0), %vm3473_vm10, 1, %v4789_v27 }
 0xb65   : > { %3484 = vperm.xlu0 (!%p3991_p0), %4435, %v3475_v33  }
 0xb66   : > { %3464 = vst.msk [vmem:[#allocation2] sm:$0xff] %vm879_vm1, %v3462_v21  ;;  %v3463_v47 = vadd.f32 %v3459_v23, %v5668_v39  ;;  %v4438_v39 = vld [vmem:[%s5850_s15] sm:$0xff] (!%p3991_p0)   ;;  %v3494_v61 = vcombine.high (!%p3991_p0), %v3462_v21, %v3462_v21 }
 0xb67   : > { %4222 = vmatpush3.bf16.msra.mxu0 (!%p3991_p0), %v4438_v39 }
 0xb68   : > { %3465 = vst.msk [vmem:[#allocation2 + $0x8] sm:$0xff] %vm879_vm1, %v3463_v47  ;;  %4223 = vmatprep.subr.bf16.mxu0 (!%p3991_p0), %v4790_v55  ;;  %v3511_v1 = vcombine.high (!%p3991_p0), %v3463_v47, %v3463_v47  ;;  %v3501_v3 = vrot.slane (!%p3991_p0), %v3494_v61, %v3500_v54 }
 0xb6a   : > { %v3518_v49 = vrot.slane %v3511_v1, %v3500_v54  ;;  %v3502_v42 = vcombine.high %v3501_v3, %v3501_v3 }
 0xb6b   : > { %4224 = vmatpush3.bf16.msra.mxu0 %v4439_v9 }
 0xb6c   : > { %v3519_v8 = vcombine.high %v3518_v49, %v3518_v49  ;;  %v3509_v22 = vrot.slane %v3502_v42, %v3500_v54 }
 0xb6e   : > { %v3526_v15 = vrot.slane %v3519_v8, %v3500_v54  ;;  %v3510_v13 = vcombine.high %v3509_v22, %v3509_v22 }
 0xb70   : > { %v3527_v18 = vcombine.high %v3526_v15, %v3526_v15  ;;  %v3568_v20 = vsel %vm3490_vm12, %v3510_v13, %v3548_v60 }
 0xbe4   : > { %v3485_v19 = vpop.permute.xlu0 %3484 }
 0xbe5   : > { %v3489_v7 = vrot.slane %v3485_v19, %v5460_v10 }
 0xbe7   : > { %vm3491_vm13 = vcmp.eq.s32.totalorder %v3489_v7, 1 }
 0xbe8   : > { %v3569_v58 = vsel %vm3491_vm13, %v3527_v18, %v3565_v53 }
 0xbe9   : > { %v3572_v30 = vcombine.low %v3568_v20, %v3569_v58 }
 0xbeb   : > { %v3579_v31 = vrot.slane %v3572_v30, %v3500_v54 }
 0xbed   : > { %v3586_v32 = vrot.slane %v3579_v31, %v3500_v54 }
 0xbef   : > { %v3588_v34 = vpack.c.bf16 %v3586_v32, %v3586_v32 }
 0xbf1   : > { %4226 = vmatmul.mubr.msk.bf16.vlgmr.msra.gmra.mrb[0].mxu0 %vm879_vm1, %v3588_v34 }
 0xcc4   : > { %v3649_v43 = vpop.f32.mrb[0].mxu0 }
 0xcc5   : > { %v3650_v45 = vadd.f32 %v3992_v41, %v3649_v43  ;;  %v4227_v44 = vpop.f32.mrb[1].mxu0 }
 0xcc6   : > { %v3652_v36 = vpop.f32.mrb[2].mxu0 }
 0xcc7   : > { %3655 = vst [vmem:[#allocation14] sm:$0x3] %v3650_v45  ;;  %v4228_v50 = vpop.f32.mrb[3].mxu0 }
 0xcc8 PF: > { %p4284_p5 = scmp.eq.s32.totalorder %s4908_s27, 1  ;;  %s4793_s6 = smov [#allocation14]  }
 0xcc9   : > { %s3665_s3 = sshll.u32 %s4793_s6, 4  ;;  %s3666_s3 = int_to_ptr.vmem [resolvable:$true] %s3665_s3 }
 0xcca   : > { %s4676_s2 = scalar_lea.vmem %s3666_s3, 32  ;;  %p4683_p7 = scmp.lt.s32.totalorder %s3666_s3, %s3666_s3 }
 0xccb   : > { %p4677_p12 = scmp.ne.s32.totalorder %s3666_s3, %s4676_s2  ;;  %p4684_p2 = scmp.lt.s32.totalorder %s4676_s2, %s4676_s2 }
 0xccd   : > { %p4678_p8 = pnand %p4677_p12, %p4284_p5  ;;  %p4685_p4 = por %p4684_p2, %p4683_p7 }
 0xccf   : > { %p4679_p3 = pneg %p4678_p8 }
 0xcd1   : > { %p4686_p9 = pnand %p4685_p4, %p4679_p3 }
 0xcd3   : > { %4689 = shalt.err (!%p4686_p9)
}
 0xcd4   : > { %s5852_s29 = sld [smem:[#allocation35_spill]] }
 0xcda   : > { %s4690_s21 = scalar_lea.hbm %s5852_s29, 32 }
 0xcdb   : > { %p4691_p10 = scmp.ne.s32.totalorder %s5852_s29, %s4690_s21  ;;  %p4696_p6 = scmp.lt.u32.totalorder %s4690_s21, %s5852_s29 }
 0xcdd   : > { %p4692_p1 = pnand %p4691_p10, %p4284_p5 }
 0xcdf   : > { %p4693_p13 = pneg %p4692_p1 }
 0xce1   : > { %p4698_p11 = pnand %p4696_p6, %p4693_p13 }
 0xce3   : > { %4701 = shalt.err (!%p4698_p11)
}
 0xce4   : > { %4250 = dma.vmem_to_hbm [thread:$0]  (%p4284_p5), %s3666_s3, 32, %s5852_s29, [#allocation5]  }
 0xce5   : > { %4739 = dma.done.wait (%p4284_p5), [#allocation5], 32  }
 0xce6   : > { %4741 = vsyncadd (%p4284_p5), [#allocation5], 4294967264 }
 0xce7 PF: > { %s5853_s23 = sld [smem:[#allocation21_spill]]  ;;  %s5854_s28 = sld [smem:[#allocation19_spill]] }
 0xce8   : > { %s5856_s24 = sld [smem:[#allocation20_spill]]  ;;  %s5857_s25 = sld [smem:[#allocation22_spill]] }
 0xce9   : > { %s5858_s21 = smov %s4748_s22 }
 0xced   : > { %s29_s26 = sadd.s32 1, %s5853_s23   ;;  %s5855_s23 = sld [smem:[#allocation23_spill]] }
 0xcee   : > { %p26_p0 = scmp.ge.s32.totalorder %s29_s26, 4   ;;  %s5859_s22 = smov %s5854_s28 }
 0xcf0   :  { %28 = sbr.rel (!%p26_p0) target bundleno = 18 (0x12), region = 212 }
 0xcf7   :  { %3678 = vsyncpa [#allocation4], 1 }
 0xcf8   :  { %3680 = vsyncpa [#allocation4 + $0x1], 1 }
 0xcf9   :  { %3681 = vsyncpa [#allocation7], 1 }
 0xcfa   :  { %3682 = vsyncpa [#allocation5], 1 }
 0xcfb   :  { %3684 = vsyncpa [#allocation5 + $0x1], 1 }

</bundles_post_ra>
